<compile_context>
chip_gen: v7x
topology: tpu7x:2x2x1
jax: 0.10.0
libtpu: 0.0.40
codegen_flags: <defaults>
</compile_context>

<pallas_src>
import math

import jax
import jax.numpy as jnp
from jax.experimental import pallas as pl
from jax.experimental.pallas import tpu as pltpu

LANE = 128


# ----------------------------------------------------------------------------
# Helpers
# ----------------------------------------------------------------------------
def _pad_to_lane(d):
    return ((d + LANE - 1) // LANE) * LANE


def _pad2(a, rows, cols):
    r, c = a.shape
    return jnp.pad(a, ((0, rows - r), (0, cols - c)))


def _softplus(x):
    # numerically stable softplus: log(1 + exp(x))
    return jnp.maximum(x, 0.0) + jnp.log1p(jnp.exp(-jnp.abs(x)))


# ----------------------------------------------------------------------------
# Fused kernel: encoder -> reparameterize -> decoder
# ----------------------------------------------------------------------------
def _cvae_kernel(x_ref, y_ref, eps_ref,
                 ew0x, ew0y, eb0, ew1, eb1, ewh, ebh,
                 dw0z, dw0y, db0, dw1, db1, dwh, dbh,
                 zmean_ref, zstd_ref, z_ref, xmean_ref, xstd_ref):
    f32 = jnp.float32

    # ---- encoder:  concat([x, y]) @ W0  ==  x @ W0[:X] + y @ W0[X:]  (no concat)
    h = jnp.dot(x_ref[...], ew0x[...], preferred_element_type=f32)
    h = h + jnp.dot(y_ref[...], ew0y[...], preferred_element_type=f32)
    h = jnp.maximum(h + eb0[...], 0.0)
    h = jnp.maximum(jnp.dot(h, ew1[...], preferred_element_type=f32) + eb1[...], 0.0)
    # fused mean|std head: single (H, 2*LP) matmul, slice at the 128-lane boundary
    heads = jnp.dot(h, ewh[...], preferred_element_type=f32) + ebh[...]
    LP = zmean_ref.shape[-1]
    z_mean = heads[:, :LP]
    z_std = _softplus(heads[:, LP:]) + 1e-6
    zmean_ref[...] = z_mean
    zstd_ref[...] = z_std

    # ---- reparameterization:  z = eps * std + mean
    # (padded latent lanes of eps are zero, so padded lanes of z are exactly zero)
    S, B, _ = eps_ref.shape
    z = eps_ref[...] * z_std[None, :, :] + z_mean[None, :, :]
    z_ref[...] = z

    # ---- decoder:  concat([z, y.expand(S)]) @ W0
    #             ==  z @ W0[:L]  +  (y @ W0[L:] + b0) tiled over the sample axis
    HP = db0.shape[-1]
    y_term = jnp.dot(y_ref[...], dw0y[...], preferred_element_type=f32) + db0[...]  # (B, HP)
    zf = z.reshape(S * B, LP)
    h = jnp.dot(zf, dw0z[...], preferred_element_type=f32) + jnp.tile(y_term, (S, 1))
    h = jnp.maximum(h, 0.0)
    h = jnp.maximum(jnp.dot(h, dw1[...], preferred_element_type=f32) + db1[...], 0.0)
    dheads = jnp.dot(h, dwh[...], preferred_element_type=f32) + dbh[...]            # (S*B, 2*XP)
    XP = xmean_ref.shape[-1]
    xmean_ref[...] = dheads[:, :XP].reshape(S, B, XP)
    xstd_ref[...] = (_softplus(dheads[:, XP:]) + 1e-6).reshape(S, B, XP)


# ----------------------------------------------------------------------------
# Parameter preparation: pad + split + fuse (done ONCE, not per forward call)
# ----------------------------------------------------------------------------
def prepare_cvae_params(enc_params, dec_params, x_dim, y_dim, latent_dim):
    """Convert raw AutoencoderLayer params (in,out layout) into the lane-dense,
    split/fused layout the kernel expects.  All padding is zeros, so padded
    lanes/rows contribute nothing to the logical outputs."""
    ew0, eb0, ew1, eb1, ewm, ebm, ews, ebs = enc_params
    dw0, db0, dw1, db1, dwm, dbm, dws, dbs = dec_params

    XP, YP, LP = _pad_to_lane(x_dim), _pad_to_lane(y_dim), _pad_to_lane(latent_dim)
    H0P, H1P = _pad_to_lane(ew0.shape[1]), _pad_to_lane(ew1.shape[1])
    G0P, G1P = _pad_to_lane(dw0.shape[1]), _pad_to_lane(dw1.shape[1])

    # encoder (input = x_dim + y_dim)
    enc_p = (
        _pad2(ew0[:x_dim], XP, H0P),                       # ew0x
        _pad2(ew0[x_dim:], YP, H0P),                       # ew0y
        _pad2(eb0, 1, H0P),
        _pad2(ew1, H0P, H1P),
        _pad2(eb1, 1, H1P),
        jnp.concatenate([_pad2(ewm, H1P, LP), _pad2(ews, H1P, LP)], axis=1),  # fused heads
        jnp.concatenate([_pad2(ebm, 1, LP), _pad2(ebs, 1, LP)], axis=1),
    )
    # decoder (input = latent_dim + y_dim)
    dec_p = (
        _pad2(dw0[:latent_dim], LP, G0P),                  # dw0z
        _pad2(dw0[latent_dim:], YP, G0P),                  # dw0y
        _pad2(db0, 1, G0P),
        _pad2(dw1, G0P, G1P),
        _pad2(db1, 1, G1P),
        jnp.concatenate([_pad2(dwm, G1P, XP), _pad2(dws, G1P, XP)], axis=1),  # fused heads
        jnp.concatenate([_pad2(dbm, 1, XP), _pad2(dbs, 1, XP)], axis=1),
    )
    return enc_p, dec_p


# ----------------------------------------------------------------------------
# Forward wrapper (single fused pallas_call)
# ----------------------------------------------------------------------------
def cvae_forward(x, y, enc_padded, dec_padded, eps):
    """Returns (z_mean, z_std, x_mean, x_std, z): the parameters of the q(z|x)
    and p(x|z) Normal distributions plus the sampled latents (standard-normal
    eps is drawn with jax.random in the caller, matching p_z.sample)."""
    B, x_dim = x.shape
    S, _, latent_dim = eps.shape
    y_dim = y.shape[-1]

    XP = dec_padded[5].shape[1] // 2     # fused decoder head width / 2
    LP = enc_padded[5].shape[1] // 2     # fused encoder head width / 2
    YP = enc_padded[1].shape[0]
    H0P, H1P = enc_padded[2].shape[-1], enc_padded[4].shape[-1]
    G0P, G1P = dec_padded[2].shape[-1], dec_padded[4].shape[-1]

    # zero-pad activations to 128-lane widths (cheap, outside the kernel)
    x_p = jnp.pad(x, ((0, 0), (0, XP - x_dim)))
    y_p = jnp.pad(y, ((0, 0), (0, YP - y_dim)))
    eps_p = jnp.pad(eps, ((0, 0), (0, 0), (0, LP - latent_dim)))

    out_shape = (
        jax.ShapeDtypeStruct((B, LP), jnp.float32),      # z_mean (padded)
        jax.ShapeDtypeStruct((B, LP), jnp.float32),      # z_std  (padded)
        jax.ShapeDtypeStruct((S, B, LP), jnp.float32),   # z      (padded)
        jax.ShapeDtypeStruct((S, B, XP), jnp.float32),   # x_mean (padded)
        jax.ShapeDtypeStruct((S, B, XP), jnp.float32),   # x_std  (padded)
    )

    inputs = (x_p, y_p, eps_p) + tuple(enc_padded) + tuple(dec_padded)

    flops = 2 * B * (XP * H0P + YP * H0P + H0P * H1P + H1P * 2 * LP)
    flops += 2 * (B * YP * G0P + S * B * (LP * G0P + G0P * G1P + G1P * 2 * XP))
    transcendentals = 2 * (B * LP + S * B * XP)           # exp + log1p in softplus
    bytes_accessed = sum(int(a.size) * 4 for a in inputs)
    bytes_accessed += sum(int(math.prod(s.shape)) * 4 for s in out_shape)

    vmem = pl.BlockSpec(memory_space=pltpu.MemorySpace.VMEM)

    z_mean_p, z_std_p, z_p, x_mean_p, x_std_p = pl.pallas_call(
        _cvae_kernel,
        out_shape=out_shape,
        in_specs=[vmem] * len(inputs),
        out_specs=tuple([vmem] * len(out_shape)),
        cost_estimate=pl.CostEstimate(
            flops=flops,
            transcendentals=transcendentals,
            bytes_accessed=bytes_accessed),
    )(*inputs)

    # slice away lane padding
    z_mean = z_mean_p[:, :latent_dim]
    z_std = z_std_p[:, :latent_dim]
    z = z_p[:, :, :latent_dim]
    x_mean = x_mean_p[:, :, :x_dim]
    x_std = x_std_p[:, :, :x_dim]
    return z_mean, z_std, x_mean, x_std, z


# ----------------------------------------------------------------------------
# Deterministic parameter init (mirrors torch.nn.Linear default init)
# ----------------------------------------------------------------------------
def _make_linear(key, in_dim, out_dim):
    kw, kb = jax.random.split(key)
    bound = 1.0 / math.sqrt(in_dim)
    w = jax.random.uniform(kw, (in_dim, out_dim), jnp.float32, -bound, bound)
    b = jax.random.uniform(kb, (1, out_dim), jnp.float32, -bound, bound)
    return w, b


def make_autoencoder_layer_params(key, input_dim, output_dim, hidden_dims):
    assert len(hidden_dims) == 2, "kernel is specialized to 2 hidden layers"
    k0, k1, km, ks = jax.random.split(key, 4)
    w0, b0 = _make_linear(k0, input_dim, hidden_dims[0])
    w1, b1 = _make_linear(k1, hidden_dims[0], hidden_dims[1])
    wm, bm = _make_linear(km, hidden_dims[1], output_dim)
    ws, bs = _make_linear(ks, hidden_dims[1], output_dim)
    return (w0, b0, w1, b1, wm, bm, ws, bs)


# ----------------------------------------------------------------------------
# Pure-JAX reference (for correctness check, uses the raw unpadded params)
# ----------------------------------------------------------------------------
def _ref_mlp(h, params):
    w0, b0, w1, b1, wm, bm, ws, bs = params
    h = jax.nn.relu(h @ w0 + b0)
    h = jax.nn.relu(h @ w1 + b1)
    mean = h @ wm + bm
    std = jax.nn.softplus(h @ ws + bs) + 1e-6
    return mean, std


def _ref_forward(x, y, enc_params, dec_params, eps):
    z_mean, z_std = _ref_mlp(jnp.concatenate([x, y], axis=-1), enc_params)
    z = eps * z_std[None] + z_mean[None]
    S = eps.shape[0]
    y_b = jnp.broadcast_to(y[None], (S,) + y.shape)
    x_mean, x_std = _ref_mlp(jnp.concatenate([z, y_b], axis=-1), dec_params)
    return z_mean, z_std, x_mean, x_std, z


# ----------------------------------------------------------------------------
if __name__ == "__main__":
    key = jax.random.PRNGKey(0)
    kx, ky, keps, kenc, kdec = jax.random.split(key, 5)

    # small shapes consistent with the module's forward
    B, X_DIM, Y_DIM, LATENT, N_SAMPLES = 8, 16, 8, 4, 3
    HIDDEN = (32, 32)

    x = jax.random.normal(kx, (B, X_DIM), jnp.float32)
    y = jax.random.normal(ky, (B, Y_DIM), jnp.float32)
    # p_z.sample((n_samples,)) — standard normal drawn outside the kernel
    eps = jax.random.normal(keps, (N_SAMPLES, B, LATENT), jnp.float32)

    enc_params = make_autoencoder_layer_params(kenc, X_DIM + Y_DIM, LATENT, HIDDEN)
    dec_params = make_autoencoder_layer_params(kdec, LATENT + Y_DIM, X_DIM, HIDDEN)

    # pad/split/fuse weights once (kept in this layout for repeated forwards)
    enc_padded, dec_padded = prepare_cvae_params(
        enc_params, dec_params, X_DIM, Y_DIM, LATENT)

    outs = cvae_forward(x, y, enc_padded, dec_padded, eps)
    outs = jax.block_until_ready(outs)

    refs = _ref_forward(x, y, enc_params, dec_params, eps)
    for o, r in zip(outs, refs):
        assert o.shape == r.shape and o.dtype == r.dtype
        assert jnp.allclose(o, r, rtol=1e-4, atol=1e-4), "mismatch vs reference"

    print("KERNEL_OK")
</pallas_src>

<mosaic_0001>
module attributes {stable_mosaic.version = 11 : i64} {
  func.func @_cvae_kernel(%arg0: memref<8x128xf32, #tpu.memory_space<vmem>>, %arg1: memref<8x128xf32, #tpu.memory_space<vmem>>, %arg2: memref<3x8x128xf32, #tpu.memory_space<vmem>>, %arg3: memref<128x128xf32, #tpu.memory_space<vmem>>, %arg4: memref<128x128xf32, #tpu.memory_space<vmem>>, %arg5: memref<1x128xf32, #tpu.memory_space<vmem>>, %arg6: memref<128x128xf32, #tpu.memory_space<vmem>>, %arg7: memref<1x128xf32, #tpu.memory_space<vmem>>, %arg8: memref<128x256xf32, #tpu.memory_space<vmem>>, %arg9: memref<1x256xf32, #tpu.memory_space<vmem>>, %arg10: memref<128x128xf32, #tpu.memory_space<vmem>>, %arg11: memref<128x128xf32, #tpu.memory_space<vmem>>, %arg12: memref<1x128xf32, #tpu.memory_space<vmem>>, %arg13: memref<128x128xf32, #tpu.memory_space<vmem>>, %arg14: memref<1x128xf32, #tpu.memory_space<vmem>>, %arg15: memref<128x256xf32, #tpu.memory_space<vmem>>, %arg16: memref<1x256xf32, #tpu.memory_space<vmem>>, %arg17: memref<8x128xf32, #tpu.memory_space<vmem>>, %arg18: memref<8x128xf32, #tpu.memory_space<vmem>>, %arg19: memref<3x8x128xf32, #tpu.memory_space<vmem>>, %arg20: memref<3x8x128xf32, #tpu.memory_space<vmem>>, %arg21: memref<3x8x128xf32, #tpu.memory_space<vmem>>) attributes {dimension_semantics = [], scalar_prefetch = 0 : i64, scratch_operands = 0 : i64, tpu.core_type = #tpu.core_type<tc>} {
    %c0 = arith.constant 0 : index
    %c0_0 = arith.constant 0 : index
    %0 = vector.load %arg0[%c0, %c0_0] : memref<8x128xf32, #tpu.memory_space<vmem>>, vector<8x128xf32>
    %c0_1 = arith.constant 0 : index
    %c0_2 = arith.constant 0 : index
    %1 = vector.load %arg3[%c0_1, %c0_2] : memref<128x128xf32, #tpu.memory_space<vmem>>, vector<128x128xf32>
    %cst = arith.constant dense<0.000000e+00> : vector<8x128xf32>
    %2 = tpu.matmul %0, %1, %cst {dimension_numbers = #tpu.dot_dimension_numbers<[1], [0], [0], [1], [0, 0, 1, 1], [], []>} : vector<8x128xf32>, vector<128x128xf32>, vector<8x128xf32> -> vector<8x128xf32>
    %c0_3 = arith.constant 0 : index
    %c0_4 = arith.constant 0 : index
    %3 = vector.load %arg1[%c0_3, %c0_4] : memref<8x128xf32, #tpu.memory_space<vmem>>, vector<8x128xf32>
    %c0_5 = arith.constant 0 : index
    %c0_6 = arith.constant 0 : index
    %4 = vector.load %arg4[%c0_5, %c0_6] : memref<128x128xf32, #tpu.memory_space<vmem>>, vector<128x128xf32>
    %cst_7 = arith.constant dense<0.000000e+00> : vector<8x128xf32>
    %5 = tpu.matmul %3, %4, %cst_7 {dimension_numbers = #tpu.dot_dimension_numbers<[1], [0], [0], [1], [0, 0, 1, 1], [], []>} : vector<8x128xf32>, vector<128x128xf32>, vector<8x128xf32> -> vector<8x128xf32>
    %6 = arith.addf %2, %5 : vector<8x128xf32>
    %c0_8 = arith.constant 0 : index
    %c0_9 = arith.constant 0 : index
    %7 = vector.load %arg5[%c0_8, %c0_9] : memref<1x128xf32, #tpu.memory_space<vmem>>, vector<1x128xf32>
    %8 = vector.broadcast %7 : vector<1x128xf32> to vector<8x128xf32>
    %9 = arith.addf %6, %8 : vector<8x128xf32>
    %cst_10 = arith.constant 0.000000e+00 : f32
    %10 = vector.broadcast %cst_10 : f32 to vector<8x128xf32>
    %11 = arith.maximumf %9, %10 : vector<8x128xf32>
    %c0_11 = arith.constant 0 : index
    %c0_12 = arith.constant 0 : index
    %12 = vector.load %arg6[%c0_11, %c0_12] : memref<128x128xf32, #tpu.memory_space<vmem>>, vector<128x128xf32>
    %cst_13 = arith.constant dense<0.000000e+00> : vector<8x128xf32>
    %13 = tpu.matmul %11, %12, %cst_13 {dimension_numbers = #tpu.dot_dimension_numbers<[1], [0], [0], [1], [0, 0, 1, 1], [], []>} : vector<8x128xf32>, vector<128x128xf32>, vector<8x128xf32> -> vector<8x128xf32>
    %c0_14 = arith.constant 0 : index
    %c0_15 = arith.constant 0 : index
    %14 = vector.load %arg7[%c0_14, %c0_15] : memref<1x128xf32, #tpu.memory_space<vmem>>, vector<1x128xf32>
    %15 = vector.broadcast %14 : vector<1x128xf32> to vector<8x128xf32>
    %16 = arith.addf %13, %15 : vector<8x128xf32>
    %cst_16 = arith.constant 0.000000e+00 : f32
    %17 = vector.broadcast %cst_16 : f32 to vector<8x128xf32>
    %18 = arith.maximumf %16, %17 : vector<8x128xf32>
    %c0_17 = arith.constant 0 : index
    %c0_18 = arith.constant 0 : index
    %19 = vector.load %arg8[%c0_17, %c0_18] : memref<128x256xf32, #tpu.memory_space<vmem>>, vector<128x256xf32>
    %cst_19 = arith.constant dense<0.000000e+00> : vector<8x256xf32>
    %20 = tpu.matmul %18, %19, %cst_19 {dimension_numbers = #tpu.dot_dimension_numbers<[1], [0], [0], [1], [0, 0, 1, 1], [], []>} : vector<8x128xf32>, vector<128x256xf32>, vector<8x256xf32> -> vector<8x256xf32>
    %c0_20 = arith.constant 0 : index
    %c0_21 = arith.constant 0 : index
    %21 = vector.load %arg9[%c0_20, %c0_21] : memref<1x256xf32, #tpu.memory_space<vmem>>, vector<1x256xf32>
    %22 = vector.broadcast %21 : vector<1x256xf32> to vector<8x256xf32>
    %23 = arith.addf %20, %22 : vector<8x256xf32>
    %24 = vector.extract_strided_slice %23 {offsets = [0, 0], sizes = [8, 128], strides = [1, 1]} : vector<8x256xf32> to vector<8x128xf32>
    %25 = vector.extract_strided_slice %23 {offsets = [0, 128], sizes = [8, 128], strides = [1, 1]} : vector<8x256xf32> to vector<8x128xf32>
    %cst_22 = arith.constant 0.000000e+00 : f32
    %26 = vector.broadcast %cst_22 : f32 to vector<8x128xf32>
    %27 = arith.maximumf %25, %26 : vector<8x128xf32>
    %28 = math.absf %25 : vector<8x128xf32>
    %cst_23 = arith.constant 0.000000e+00 : f32
    %29 = vector.broadcast %cst_23 : f32 to vector<8x128xf32>
    %30 = arith.subf %29, %28 : vector<8x128xf32>
    %31 = math.exp %30 : vector<8x128xf32>
    %32 = math.log1p %31 : vector<8x128xf32>
    %33 = arith.addf %27, %32 : vector<8x128xf32>
    %cst_24 = arith.constant 9.99999997E-7 : f32
    %34 = vector.broadcast %cst_24 : f32 to vector<8x128xf32>
    %35 = arith.addf %33, %34 : vector<8x128xf32>
    %c0_25 = arith.constant 0 : index
    %c0_26 = arith.constant 0 : index
    %36 = vector.load %arg17[%c0_25, %c0_26] : memref<8x128xf32, #tpu.memory_space<vmem>>, vector<8x128xf32>
    tpu.vector_store %arg17[%c0_25, %c0_26], %24 {strides = array<i32>} : memref<8x128xf32, #tpu.memory_space<vmem>>, vector<8x128xf32>,
    %c0_27 = arith.constant 0 : index
    %c0_28 = arith.constant 0 : index
    %37 = vector.load %arg18[%c0_27, %c0_28] : memref<8x128xf32, #tpu.memory_space<vmem>>, vector<8x128xf32>
    tpu.vector_store %arg18[%c0_27, %c0_28], %35 {strides = array<i32>} : memref<8x128xf32, #tpu.memory_space<vmem>>, vector<8x128xf32>,
    %c0_29 = arith.constant 0 : index
    %c0_30 = arith.constant 0 : index
    %c0_31 = arith.constant 0 : index
    %38 = vector.load %arg2[%c0_29, %c0_30, %c0_31] : memref<3x8x128xf32, #tpu.memory_space<vmem>>, vector<3x8x128xf32>
    %39 = vector.shape_cast %35 : vector<8x128xf32> to vector<1x8x128xf32>
    %40 = vector.broadcast %39 : vector<1x8x128xf32> to vector<3x8x128xf32>
    %41 = arith.mulf %38, %40 : vector<3x8x128xf32>
    %42 = vector.shape_cast %24 : vector<8x128xf32> to vector<1x8x128xf32>
    %43 = vector.broadcast %42 : vector<1x8x128xf32> to vector<3x8x128xf32>
    %44 = arith.addf %41, %43 : vector<3x8x128xf32>
    %c0_32 = arith.constant 0 : index
    %c0_33 = arith.constant 0 : index
    %c0_34 = arith.constant 0 : index
    %45 = vector.load %arg19[%c0_32, %c0_33, %c0_34] : memref<3x8x128xf32, #tpu.memory_space<vmem>>, vector<3x8x128xf32>
    tpu.vector_store %arg19[%c0_32, %c0_33, %c0_34], %44 {strides = array<i32>} : memref<3x8x128xf32, #tpu.memory_space<vmem>>, vector<3x8x128xf32>,
    %c0_35 = arith.constant 0 : index
    %c0_36 = arith.constant 0 : index
    %46 = vector.load %arg1[%c0_35, %c0_36] : memref<8x128xf32, #tpu.memory_space<vmem>>, vector<8x128xf32>
    %c0_37 = arith.constant 0 : index
    %c0_38 = arith.constant 0 : index
    %47 = vector.load %arg11[%c0_37, %c0_38] : memref<128x128xf32, #tpu.memory_space<vmem>>, vector<128x128xf32>
    %cst_39 = arith.constant dense<0.000000e+00> : vector<8x128xf32>
    %48 = tpu.matmul %46, %47, %cst_39 {dimension_numbers = #tpu.dot_dimension_numbers<[1], [0], [0], [1], [0, 0, 1, 1], [], []>} : vector<8x128xf32>, vector<128x128xf32>, vector<8x128xf32> -> vector<8x128xf32>
    %c0_40 = arith.constant 0 : index
    %c0_41 = arith.constant 0 : index
    %49 = vector.load %arg12[%c0_40, %c0_41] : memref<1x128xf32, #tpu.memory_space<vmem>>, vector<1x128xf32>
    %50 = vector.broadcast %49 : vector<1x128xf32> to vector<8x128xf32>
    %51 = arith.addf %48, %50 : vector<8x128xf32>
    %52 = vector.shape_cast %44 : vector<3x8x128xf32> to vector<24x128xf32>
    %c0_42 = arith.constant 0 : index
    %c0_43 = arith.constant 0 : index
    %53 = vector.load %arg10[%c0_42, %c0_43] : memref<128x128xf32, #tpu.memory_space<vmem>>, vector<128x128xf32>
    %cst_44 = arith.constant dense<0.000000e+00> : vector<24x128xf32>
    %54 = tpu.matmul %52, %53, %cst_44 {dimension_numbers = #tpu.dot_dimension_numbers<[1], [0], [0], [1], [0, 0, 1, 1], [], []>} : vector<24x128xf32>, vector<128x128xf32>, vector<24x128xf32> -> vector<24x128xf32>
    %55 = tpu.concatenate %51, %51, %51 in 0 : vector<8x128xf32>, vector<8x128xf32>, vector<8x128xf32> -> vector<24x128xf32>
    %56 = arith.addf %54, %55 : vector<24x128xf32>
    %cst_45 = arith.constant 0.000000e+00 : f32
    %57 = vector.broadcast %cst_45 : f32 to vector<24x128xf32>
    %58 = arith.maximumf %56, %57 : vector<24x128xf32>
    %c0_46 = arith.constant 0 : index
    %c0_47 = arith.constant 0 : index
    %59 = vector.load %arg13[%c0_46, %c0_47] : memref<128x128xf32, #tpu.memory_space<vmem>>, vector<128x128xf32>
    %cst_48 = arith.constant dense<0.000000e+00> : vector<24x128xf32>
    %60 = tpu.matmul %58, %59, %cst_48 {dimension_numbers = #tpu.dot_dimension_numbers<[1], [0], [0], [1], [0, 0, 1, 1], [], []>} : vector<24x128xf32>, vector<128x128xf32>, vector<24x128xf32> -> vector<24x128xf32>
    %c0_49 = arith.constant 0 : index
    %c0_50 = arith.constant 0 : index
    %61 = vector.load %arg14[%c0_49, %c0_50] : memref<1x128xf32, #tpu.memory_space<vmem>>, vector<1x128xf32>
    %62 = vector.broadcast %61 : vector<1x128xf32> to vector<24x128xf32>
    %63 = arith.addf %60, %62 : vector<24x128xf32>
    %cst_51 = arith.constant 0.000000e+00 : f32
    %64 = vector.broadcast %cst_51 : f32 to vector<24x128xf32>
    %65 = arith.maximumf %63, %64 : vector<24x128xf32>
    %c0_52 = arith.constant 0 : index
    %c0_53 = arith.constant 0 : index
    %66 = vector.load %arg15[%c0_52, %c0_53] : memref<128x256xf32, #tpu.memory_space<vmem>>, vector<128x256xf32>
    %cst_54 = arith.constant dense<0.000000e+00> : vector<24x256xf32>
    %67 = tpu.matmul %65, %66, %cst_54 {dimension_numbers = #tpu.dot_dimension_numbers<[1], [0], [0], [1], [0, 0, 1, 1], [], []>} : vector<24x128xf32>, vector<128x256xf32>, vector<24x256xf32> -> vector<24x256xf32>
    %c0_55 = arith.constant 0 : index
    %c0_56 = arith.constant 0 : index
    %68 = vector.load %arg16[%c0_55, %c0_56] : memref<1x256xf32, #tpu.memory_space<vmem>>, vector<1x256xf32>
    %69 = vector.broadcast %68 : vector<1x256xf32> to vector<24x256xf32>
    %70 = arith.addf %67, %69 : vector<24x256xf32>
    %71 = vector.extract_strided_slice %70 {offsets = [0, 0], sizes = [24, 128], strides = [1, 1]} : vector<24x256xf32> to vector<24x128xf32>
    %72 = vector.shape_cast %71 : vector<24x128xf32> to vector<3x8x128xf32>
    %c0_57 = arith.constant 0 : index
    %c0_58 = arith.constant 0 : index
    %c0_59 = arith.constant 0 : index
    %73 = vector.load %arg20[%c0_57, %c0_58, %c0_59] : memref<3x8x128xf32, #tpu.memory_space<vmem>>, vector<3x8x128xf32>
    tpu.vector_store %arg20[%c0_57, %c0_58, %c0_59], %72 {strides = array<i32>} : memref<3x8x128xf32, #tpu.memory_space<vmem>>, vector<3x8x128xf32>,
    %74 = vector.extract_strided_slice %70 {offsets = [0, 128], sizes = [24, 128], strides = [1, 1]} : vector<24x256xf32> to vector<24x128xf32>
    %cst_60 = arith.constant 0.000000e+00 : f32
    %75 = vector.broadcast %cst_60 : f32 to vector<24x128xf32>
    %76 = arith.maximumf %74, %75 : vector<24x128xf32>
    %77 = math.absf %74 : vector<24x128xf32>
    %cst_61 = arith.constant 0.000000e+00 : f32
    %78 = vector.broadcast %cst_61 : f32 to vector<24x128xf32>
    %79 = arith.subf %78, %77 : vector<24x128xf32>
    %80 = math.exp %79 : vector<24x128xf32>
    %81 = math.log1p %80 : vector<24x128xf32>
    %82 = arith.addf %76, %81 : vector<24x128xf32>
    %cst_62 = arith.constant 9.99999997E-7 : f32
    %83 = vector.broadcast %cst_62 : f32 to vector<24x128xf32>
    %84 = arith.addf %82, %83 : vector<24x128xf32>
    %85 = vector.shape_cast %84 : vector<24x128xf32> to vector<3x8x128xf32>
    %c0_63 = arith.constant 0 : index
    %c0_64 = arith.constant 0 : index
    %c0_65 = arith.constant 0 : index
    %86 = vector.load %arg21[%c0_63, %c0_64, %c0_65] : memref<3x8x128xf32, #tpu.memory_space<vmem>>, vector<3x8x128xf32>
    tpu.vector_store %arg21[%c0_63, %c0_64, %c0_65], %85 {strides = array<i32>} : memref<3x8x128xf32, #tpu.memory_space<vmem>>, vector<3x8x128xf32>,
    return
  }
}

</mosaic_0001>

<bundles_post_ra>
// kernel: tpu_custom_call.1
= control target key start
LH: loop header
LB: loop body
LE: loop exit
PB: predicated region body
PF: predicated region fallthrough
CT: control target
= control target key end

     0   :  { %s2629_s0 = inlined_call_operand.hbm [shape: f32[8,128], index: 0, kind: input, shape index: {}]   ;;  %s2630_s1 = inlined_call_operand.hbm [shape: f32[8,128], index: 1, kind: input, shape index: {}]   ;;  %s2631_s2 = inlined_call_operand.hbm [shape: f32[3,8,128], index: 2, kind: input, shape index: {}]   ;;  %s2632_s3 = inlined_call_operand.hbm [shape: f32[128,128], index: 3, kind: input, shape index: {}]   ;;  %s2633_s4 = inlined_call_operand.hbm [shape: f32[128,128], index: 4, kind: input, shape index: {}]   ;;  %s2634_s5 = inlined_call_operand.vmem [shape: f32[1,128], index: 5, kind: input, shape index: {}]   ;;  %s2635_s6 = inlined_call_operand.hbm [shape: f32[128,128], index: 6, kind: input, shape index: {}]   ;;  %s2636_s7 = inlined_call_operand.vmem [shape: f32[1,128], index: 7, kind: input, shape index: {}]   ;;  %s2637_s8 = inlined_call_operand.hbm [shape: f32[128,256], index: 8, kind: input, shape index: {}]   ;;  %s2638_s9 = inlined_call_operand.vmem [shape: f32[1,256], index: 9, kind: input, shape index: {}]   ;;  %s2639_s10 = inlined_call_operand.hbm [shape: f32[128,128], index: 10, kind: input, shape index: {}]   ;;  %s2640_s11 = inlined_call_operand.hbm [shape: f32[128,128], index: 11, kind: input, shape index: {}]   ;;  %s2641_s12 = inlined_call_operand.vmem [shape: f32[1,128], index: 12, kind: input, shape index: {}]   ;;  %s2642_s13 = inlined_call_operand.hbm [shape: f32[128,128], index: 13, kind: input, shape index: {}]   ;;  %s2643_s14 = inlined_call_operand.vmem [shape: f32[1,128], index: 14, kind: input, shape index: {}]   ;;  %s2644_s15 = inlined_call_operand.hbm [shape: f32[128,256], index: 15, kind: input, shape index: {}]   ;;  %s2645_s16 = inlined_call_operand.vmem [shape: f32[1,256], index: 16, kind: input, shape index: {}]   ;;  %s2646_s17 = inlined_call_operand.hbm [shape: f32[8,128], index: 17, kind: output, shape index: {0}]   ;;  %s2647_s18 = inlined_call_operand.hbm [shape: f32[8,128], index: 18, kind: output, shape index: {1}]   ;;  %s2648_s19 = inlined_call_operand.hbm [shape: f32[3,8,128], index: 19, kind: output, shape index: {2}]   ;;  %s2649_s20 = inlined_call_operand.hbm [shape: f32[3,8,128], index: 20, kind: output, shape index: {3}]   ;;  %s2650_s21 = inlined_call_operand.hbm [shape: f32[3,8,128], index: 21, kind: output, shape index: {4}]  }
   0x1   :  { %2657 = sst [smem:[#allocation36_spill]] %s2629_s0 }
   0x2   :  { %2658 = sst [smem:[#allocation37_spill]] %s2630_s1 }
   0x3   :  { %2659 = sst [smem:[#allocation38_spill]] %s2631_s2 }
   0x4   :  { %2660 = sst [smem:[#allocation39_spill]] %s2632_s3 }
   0x5   :  { %2661 = sst [smem:[#allocation40_spill]] %s2633_s4 }
   0x6   :  { %2662 = sst [smem:[#allocation41_spill]] %s2634_s5 }
   0x7   :  { %2663 = sst [smem:[#allocation42_spill]] %s2650_s21 }
   0x8   :  { %27 = vsyncpa [#allocation3], 0 }
   0x9   :  { %28 = vsyncpa [#allocation6], 0 }
   0xa   :  { %29 = vsyncpa [#allocation9], 0 }
   0xb   :  { %30 = vsyncpa [#allocation12], 0 }
   0xc   :  { %31 = vsyncpa [#allocation15], 0 }
   0xd   :  { %32 = vsyncpa [#allocation18], 0 }
   0xe   :  { %33 = vsyncpa [#allocation4], 0 }
   0xf   :  { %34 = vsyncpa [#allocation22], 0 }
  0x10   :  { %35 = vsyncpa [#allocation25], 0  ;;  %s2140_s2 = smov [#allocation5]   ;;  %s2664_s3 = sld [smem:[#allocation37_spill]] }
  0x11   :  { %s52_s25 = sshll.u32 %s2140_s2, 4  ;;  %s53_s25 = int_to_ptr.vmem [resolvable:$true] %s52_s25 }
  0x16   :  { %s1770_s28 = scalar_lea.hbm %s2664_s3, 128 }
  0x17   :  { %p1771_p0 = scmp.ne.s32.totalorder %s2664_s3, %s1770_s28  ;;  %p1774_p1 = scmp.lt.u32.totalorder %s1770_s28, %s2664_s3 }
  0x19   :  { %p1776_p2 = pnand %p1774_p1, %p1771_p0 }
  0x1b   :  { %1779 = shalt.err (!%p1776_p2)
}
  0x1c   :  { %s1780_s5 = scalar_lea.vmem %s53_s25, 128  ;;  %p1785_p4 = scmp.lt.s32.totalorder %s53_s25, %s53_s25 }
  0x1d   :  { %p1781_p3 = scmp.ne.s32.totalorder %s53_s25, %s1780_s5  ;;  %p1786_p5 = scmp.lt.s32.totalorder %s1780_s5, %s1780_s5 }
  0x1f   :  { %p1787_p6 = por %p1786_p5, %p1785_p4 }
  0x21   :  { %p1788_p7 = pnand %p1787_p6, %p1781_p3 }
  0x23   :  { %1791 = shalt.err (!%p1788_p7)
}
  0x24   :  { %55 = dma.hbm_to_vmem [thread:$0]  %s2664_s3, 128, %s53_s25, [#allocation6]  }
  0x25   :  { %s2141_s1 = smov [#allocation8]   ;;  %s2142_s2 = smov [#allocation11]  }
  0x26   :  { %s73_s24 = sshll.u32 %s2141_s1, 4  ;;  %s99_s26 = sshll.u32 %s2142_s2, 4  ;;  %s74_s24 = int_to_ptr.vmem [resolvable:$true] %s73_s24  ;;  %s100_s26 = int_to_ptr.vmem [resolvable:$true] %s99_s26 }
  0x27   :  { %s2665_s29 = sld [smem:[#allocation39_spill]] }
  0x2d   :  { %s1792_s0 = scalar_lea.hbm %s2665_s29, 2048 }
  0x2e   :  { %p1793_p8 = scmp.ne.s32.totalorder %s2665_s29, %s1792_s0  ;;  %p1796_p9 = scmp.lt.u32.totalorder %s1792_s0, %s2665_s29 }
  0x30   :  { %p1798_p10 = pnand %p1796_p9, %p1793_p8 }
  0x32   :  { %1801 = shalt.err (!%p1798_p10)
}
  0x33   :  { %s1802_s25 = scalar_lea.vmem %s74_s24, 2048  ;;  %p1807_p12 = scmp.lt.s32.totalorder %s74_s24, %s74_s24 }
  0x34   :  { %p1803_p11 = scmp.ne.s32.totalorder %s74_s24, %s1802_s25  ;;  %p1808_p13 = scmp.lt.s32.totalorder %s1802_s25, %s1802_s25 }
  0x36   :  { %p1809_p0 = por %p1808_p13, %p1807_p12 }
  0x38   :  { %p1810_p1 = pnand %p1809_p0, %p1803_p11 }
  0x3a   :  { %1813 = shalt.err (!%p1810_p1)
}
  0x3b   :  { %s2143_s3 = smov 128   ;;  %s2144_s22 = smov 8  }
  0x3c   :  { %79 = dma.hbm_to_vmem [thread:$0]  %s2665_s29, 2048, %s74_s24, [#allocation9], %s2143_s3, %s2143_s3, %s2144_s22  }
  0x3d   :  { %s1814_s27 = scalar_lea.hbm %s2635_s6, 2048 }
  0x3e   :  { %p1815_p2 = scmp.ne.s32.totalorder %s2635_s6, %s1814_s27  ;;  %p1818_p3 = scmp.lt.u32.totalorder %s1814_s27, %s2635_s6 }
  0x40   :  { %p1820_p4 = pnand %p1818_p3, %p1815_p2 }
  0x42   :  { %1823 = shalt.err (!%p1820_p4)
}
  0x43   :  { %s1824_s5 = scalar_lea.vmem %s100_s26, 2048  ;;  %p1829_p6 = scmp.lt.s32.totalorder %s100_s26, %s100_s26 }
  0x44   :  { %p1825_p5 = scmp.ne.s32.totalorder %s100_s26, %s1824_s5  ;;  %p1830_p7 = scmp.lt.s32.totalorder %s1824_s5, %s1824_s5 }
  0x46   :  { %p1831_p8 = por %p1830_p7, %p1829_p6 }
  0x48   :  { %p1832_p9 = pnand %p1831_p8, %p1825_p5 }
  0x4a   :  { %1835 = shalt.err (!%p1832_p9)
}
  0x4b   :  { %105 = dma.hbm_to_vmem [thread:$0]  %s2635_s6, 2048, %s100_s26, [#allocation12], %s2143_s3, %s2143_s3, %s2144_s22  }
  0x4c   :  { %s2145_s25 = smov [#allocation14]   ;;  %s2146_s1 = smov [#allocation17]  }
  0x4d   :  { %s127_s23 = sshll.u32 %s2145_s25, 4  ;;  %s153_s21 = sshll.u32 %s2146_s1, 4  ;;  %s128_s23 = int_to_ptr.vmem [resolvable:$true] %s127_s23  ;;  %s154_s21 = int_to_ptr.vmem [resolvable:$true] %s153_s21 }
  0x4e   :  { %s1836_s28 = scalar_lea.hbm %s2639_s10, 2048 }
  0x4f   :  { %p1837_p10 = scmp.ne.s32.totalorder %s2639_s10, %s1836_s28  ;;  %p1840_p11 = scmp.lt.u32.totalorder %s1836_s28, %s2639_s10 }
  0x51   :  { %p1842_p12 = pnand %p1840_p11, %p1837_p10 }
  0x53   :  { %1845 = shalt.err (!%p1842_p12)
}
  0x54   :  { %s1846_s6 = scalar_lea.vmem %s128_s23, 2048  ;;  %p1851_p0 = scmp.lt.s32.totalorder %s128_s23, %s128_s23 }
  0x55   :  { %p1847_p13 = scmp.ne.s32.totalorder %s128_s23, %s1846_s6  ;;  %p1852_p1 = scmp.lt.s32.totalorder %s1846_s6, %s1846_s6 }
  0x57   :  { %p1853_p2 = por %p1852_p1, %p1851_p0 }
  0x59   :  { %p1854_p3 = pnand %p1853_p2, %p1847_p13 }
  0x5b   :  { %1857 = shalt.err (!%p1854_p3)
}
  0x5c   :  { %133 = dma.hbm_to_vmem [thread:$0]  %s2639_s10, 2048, %s128_s23, [#allocation15], %s2143_s3, %s2143_s3, %s2144_s22  }
  0x5d   :  { %s1858_s1 = scalar_lea.hbm %s2642_s13, 2048 }
  0x5e   :  { %p1859_p4 = scmp.ne.s32.totalorder %s2642_s13, %s1858_s1  ;;  %p1862_p5 = scmp.lt.u32.totalorder %s1858_s1, %s2642_s13 }
  0x60   :  { %p1864_p6 = pnand %p1862_p5, %p1859_p4 }
  0x62   :  { %1867 = shalt.err (!%p1864_p6)
}
  0x63   :  { %s1868_s4 = scalar_lea.vmem %s154_s21, 2048  ;;  %p1873_p8 = scmp.lt.s32.totalorder %s154_s21, %s154_s21 }
  0x64   :  { %p1869_p7 = scmp.ne.s32.totalorder %s154_s21, %s1868_s4  ;;  %p1874_p9 = scmp.lt.s32.totalorder %s1868_s4, %s1868_s4 }
  0x66   :  { %p1875_p10 = por %p1874_p9, %p1873_p8 }
  0x68   :  { %p1876_p11 = pnand %p1875_p10, %p1869_p7 }
  0x6a   :  { %1879 = shalt.err (!%p1876_p11)
}
  0x6b   :  { %159 = dma.hbm_to_vmem [thread:$0]  %s2642_s13, 2048, %s154_s21, [#allocation18], %s2143_s3, %s2143_s3, %s2144_s22  }
  0x6c   :  { %s2147_s30 = smov [#allocation2]   ;;  %s2148_s6 = smov [#allocation7]  }
  0x6d   :  { %s42_s5 = sshll.u32 %s2147_s30, 4  ;;  %s61_s26 = sshll.u32 %s2148_s6, 4  ;;  %s43_s5 = int_to_ptr.vmem [resolvable:$true] %s42_s5  ;;  %s62_s26 = int_to_ptr.vmem [resolvable:$true] %s61_s26 }
  0x6e   :  { %s2666_s25 = sld [smem:[#allocation36_spill]] }
  0x74   :  { %s1880_s1 = scalar_lea.hbm %s2666_s25, 128 }
  0x75   :  { %p1881_p12 = scmp.ne.s32.totalorder %s2666_s25, %s1880_s1  ;;  %p1884_p13 = scmp.lt.u32.totalorder %s1880_s1, %s2666_s25 }
  0x77   :  { %p1886_p0 = pnand %p1884_p13, %p1881_p12 }
  0x79   :  { %1889 = shalt.err (!%p1886_p0)
}
  0x7a   :  { %s1890_s13 = scalar_lea.vmem %s43_s5, 128  ;;  %p1895_p2 = scmp.lt.s32.totalorder %s43_s5, %s43_s5 }
  0x7b   :  { %p1891_p1 = scmp.ne.s32.totalorder %s43_s5, %s1890_s13  ;;  %p1896_p3 = scmp.lt.s32.totalorder %s1890_s13, %s1890_s13 }
  0x7d   :  { %p1897_p4 = por %p1896_p3, %p1895_p2 }
  0x7f   :  { %p1898_p5 = pnand %p1897_p4, %p1891_p1 }
  0x81   :  { %1901 = shalt.err (!%p1898_p5)
}
  0x82   :  { %45 = dma.hbm_to_vmem [thread:$0]  %s2666_s25, 128, %s43_s5, [#allocation3]  }
  0x83   :  { %s2667_s30 = sld [smem:[#allocation38_spill]] }
  0x89   :  { %s1902_s6 = scalar_lea.hbm %s2667_s30, 384 }
  0x8a   :  { %p1903_p6 = scmp.ne.s32.totalorder %s2667_s30, %s1902_s6  ;;  %p1906_p7 = scmp.lt.u32.totalorder %s1902_s6, %s2667_s30 }
  0x8c   :  { %p1908_p8 = pnand %p1906_p7, %p1903_p6 }
  0x8e   :  { %1911 = shalt.err (!%p1908_p8)
}
  0x8f   :  { %s1912_s27 = scalar_lea.vmem %s62_s26, 384  ;;  %p1917_p10 = scmp.lt.s32.totalorder %s62_s26, %s62_s26 }
  0x90   :  { %p1913_p9 = scmp.ne.s32.totalorder %s62_s26, %s1912_s27  ;;  %p1918_p11 = scmp.lt.s32.totalorder %s1912_s27, %s1912_s27 }
  0x92   :  { %p1919_p12 = por %p1918_p11, %p1917_p10 }
  0x94   :  { %p1920_p13 = pnand %p1919_p12, %p1913_p9 }
  0x96   :  { %1923 = shalt.err (!%p1920_p13)
}
  0x97   :  { %67 = dma.hbm_to_vmem [thread:$0]  %s2667_s30, 384, %s62_s26, [#allocation6], %s2143_s3, %s2143_s3, %s2144_s22  }
  0x98   :  { %s2149_s28 = smov [#allocation10]   ;;  %s2150_s13 = smov [#allocation13]  }
  0x99   :  { %s85_s0 = sshll.u32 %s2149_s28, 4  ;;  %s113_s21 = sshll.u32 %s2150_s13, 4  ;;  %s86_s0 = int_to_ptr.vmem [resolvable:$true] %s85_s0  ;;  %s114_s21 = int_to_ptr.vmem [resolvable:$true] %s113_s21 }
  0x9a   :  { %s2668_s23 = sld [smem:[#allocation40_spill]] }
  0xa0   :  { %s1924_s6 = scalar_lea.hbm %s2668_s23, 2048 }
  0xa1   :  { %p1925_p0 = scmp.ne.s32.totalorder %s2668_s23, %s1924_s6  ;;  %p1928_p1 = scmp.lt.u32.totalorder %s1924_s6, %s2668_s23 }
  0xa3   :  { %p1930_p2 = pnand %p1928_p1, %p1925_p0 }
  0xa5   :  { %1933 = shalt.err (!%p1930_p2)
}
  0xa6   :  { %s1934_s26 = scalar_lea.vmem %s86_s0, 2048  ;;  %p1939_p4 = scmp.lt.s32.totalorder %s86_s0, %s86_s0 }
  0xa7   :  { %p1935_p3 = scmp.ne.s32.totalorder %s86_s0, %s1934_s26  ;;  %p1940_p5 = scmp.lt.s32.totalorder %s1934_s26, %s1934_s26 }
  0xa9   :  { %p1941_p6 = por %p1940_p5, %p1939_p4 }
  0xab   :  { %p1942_p7 = pnand %p1941_p6, %p1935_p3 }
  0xad   :  { %1945 = shalt.err (!%p1942_p7)
}
  0xae   :  { %91 = dma.hbm_to_vmem [thread:$0]  %s2668_s23, 2048, %s86_s0, [#allocation9], %s2143_s3, %s2143_s3, %s2144_s22  }
  0xaf   :  { %s1946_s28 = scalar_lea.hbm %s2637_s8, 4096 }
  0xb0   :  { %p1947_p8 = scmp.ne.s32.totalorder %s2637_s8, %s1946_s28  ;;  %p1950_p9 = scmp.lt.u32.totalorder %s1946_s28, %s2637_s8 }
  0xb2   :  { %p1952_p10 = pnand %p1950_p9, %p1947_p8 }
  0xb4   :  { %1955 = shalt.err (!%p1952_p10)
}
  0xb5   :  { %s1956_s24 = scalar_lea.vmem %s114_s21, 4096  ;;  %p1961_p12 = scmp.lt.s32.totalorder %s114_s21, %s114_s21 }
  0xb6   :  { %p1957_p11 = scmp.ne.s32.totalorder %s114_s21, %s1956_s24  ;;  %p1962_p13 = scmp.lt.s32.totalorder %s1956_s24, %s1956_s24 }
  0xb8   :  { %p1963_p0 = por %p1962_p13, %p1961_p12 }
  0xba   :  { %p1964_p1 = pnand %p1963_p0, %p1957_p11 }
  0xbc   :  { %1967 = shalt.err (!%p1964_p1)
}
  0xbd   :  { %s2151_s0 = smov 256   ;;  %s2152_s23 = smov 16  }
  0xbe   :  { %119 = dma.hbm_to_vmem [thread:$0]  %s2637_s8, 4096, %s114_s21, [#allocation12], %s2151_s0, %s2151_s0, %s2152_s23  }
  0xbf   :  { %s2153_s2 = smov [#allocation16]   ;;  %s2154_s30 = smov [#allocation19]  }
  0xc0   :  { %s139_s26 = sshll.u32 %s2153_s2, 4  ;;  %s167_s27 = sshll.u32 %s2154_s30, 4  ;;  %s140_s26 = int_to_ptr.vmem [resolvable:$true] %s139_s26  ;;  %s168_s27 = int_to_ptr.vmem [resolvable:$true] %s167_s27 }
  0xc1   :  { %s1968_s28 = scalar_lea.hbm %s2640_s11, 2048 }
  0xc2   :  { %p1969_p2 = scmp.ne.s32.totalorder %s2640_s11, %s1968_s28  ;;  %p1972_p3 = scmp.lt.u32.totalorder %s1968_s28, %s2640_s11 }
  0xc4   :  { %p1974_p4 = pnand %p1972_p3, %p1969_p2 }
  0xc6   :  { %1977 = shalt.err (!%p1974_p4)
}
  0xc7   :  { %s1978_s8 = scalar_lea.vmem %s140_s26, 2048  ;;  %p1983_p6 = scmp.lt.s32.totalorder %s140_s26, %s140_s26 }
  0xc8   :  { %p1979_p5 = scmp.ne.s32.totalorder %s140_s26, %s1978_s8  ;;  %p1984_p7 = scmp.lt.s32.totalorder %s1978_s8, %s1978_s8 }
  0xca   :  { %p1985_p8 = por %p1984_p7, %p1983_p6 }
  0xcc   :  { %p1986_p9 = pnand %p1985_p8, %p1979_p5 }
  0xce   :  { %1989 = shalt.err (!%p1986_p9)
}
  0xcf   :  { %145 = dma.hbm_to_vmem [thread:$0]  %s2640_s11, 2048, %s140_s26, [#allocation15], %s2143_s3, %s2143_s3, %s2144_s22  }
  0xd0   :  { %s1990_s2 = scalar_lea.hbm %s2644_s15, 4096 }
  0xd1   :  { %p1991_p10 = scmp.ne.s32.totalorder %s2644_s15, %s1990_s2  ;;  %p1994_p11 = scmp.lt.u32.totalorder %s1990_s2, %s2644_s15 }
  0xd3   :  { %p1996_p12 = pnand %p1994_p11, %p1991_p10 }
  0xd5   :  { %1999 = shalt.err (!%p1996_p12)
}
  0xd6   :  { %s2000_s13 = scalar_lea.vmem %s168_s27, 4096  ;;  %p2005_p0 = scmp.lt.s32.totalorder %s168_s27, %s168_s27 }
  0xd7   :  { %p2001_p13 = scmp.ne.s32.totalorder %s168_s27, %s2000_s13  ;;  %p2006_p1 = scmp.lt.s32.totalorder %s2000_s13, %s2000_s13 }
  0xd9   :  { %p2007_p2 = por %p2006_p1, %p2005_p0 }
  0xdb   :  { %p2008_p3 = pnand %p2007_p2, %p2001_p13 }
  0xdd   :  { %2011 = shalt.err (!%p2008_p3)
}
  0xde   :  { %173 = dma.hbm_to_vmem [thread:$0]  %s2644_s15, 4096, %s168_s27, [#allocation18], %s2151_s0, %s2151_s0, %s2152_s23  }
  0xdf   :  { %2122 = dma.done.wait [#allocation3], 128  }
  0xe0   :  { %2123 = vsyncadd [#allocation3], 4294967168 }
  0xe1   :  { %2124 = dma.done.wait [#allocation6], 512  }
  0xe2   :  { %2125 = vsyncadd [#allocation6], 4294966784 }
  0xe3   :  { %2126 = dma.done.wait [#allocation9], 4096  }
  0xe4   :  { %2127 = vsyncadd [#allocation9], 4294963200 }
  0xe5   :  { %2128 = dma.done.wait [#allocation12], 6144  }
  0xe6   :  { %2129 = vsyncadd [#allocation12], 4294961152 }
  0xe7   :  { %2130 = dma.done.wait [#allocation15], 4096  }
  0xe8   :  { %2131 = vsyncadd [#allocation15], 4294963200 }
  0xe9   :  { %2132 = dma.done.wait [#allocation18], 6144  }
  0xea   :  { %2133 = vsyncadd [#allocation18], 4294961152  ;;  %v2155_v0 = vmov 0.0|0.0   ;;  %vm2156_vm0 = vmmov 0   ;;  %v2157_v1 = vmov 0.0   ;;  %v227_v2 = vld [vmem:[#allocation10] sm:$0xff] }
  0xeb   :  { %1523 = vmatprep.subr.bf16.mxu0 %v2155_v0  ;;  %1547 = vmatprep.subr.bf16.mxu1 %v2155_v0  ;;  %v228_v3 = vld [vmem:[#allocation10 + $0x8] sm:$0xff]  ;;  %v210_v4 = vld [vmem:[#allocation8] sm:$0xff]  ;;  %v229_v7 = vld [vmem:[#allocation10 + $0x10] sm:$0xff]  ;;  %s2669_s23 = sld [smem:[#allocation41_spill]] }
  0xec   :  { %1333 = vmatprep.mubr.msk.f32.mxu0 %vm2156_vm0, %v2157_v1  ;;  %1368 = vmatprep.mubr.msk.f32.mxu1 %vm2156_vm0, %v2157_v1  ;;  %v1524_v5 = vpack.c.bf16 %v228_v3, %v227_v2  ;;  %v211_v6 = vld [vmem:[#allocation8 + $0x8] sm:$0xff]  ;;  %v230_v8 = vld [vmem:[#allocation10 + $0x18] sm:$0xff]  ;;  %v212_v10 = vld [vmem:[#allocation8 + $0x10] sm:$0xff] }
  0xed   :  { %v1548_v9 = vpack.c.bf16 %v211_v6, %v210_v4  ;;  %v213_v11 = vld [vmem:[#allocation8 + $0x18] sm:$0xff]  ;;  %v1527_v12 = vpack.c.bf16 %v230_v8, %v229_v7  ;;  %v231_v14 = vld [vmem:[#allocation10 + $0x20] sm:$0xff]  ;;  %v232_v15 = vld [vmem:[#allocation10 + $0x28] sm:$0xff] }
  0xee   :  { %1525 = vmatpush3.bf16.msra.mxu0 %v1524_v5  ;;  %v1551_v13 = vpack.c.bf16 %v213_v11, %v212_v10  ;;  %v214_v16 = vld [vmem:[#allocation8 + $0x20] sm:$0xff]  ;;  %v215_v17 = vld [vmem:[#allocation8 + $0x28] sm:$0xff]  ;;  %v1530_v18 = vpack.c.bf16 %v232_v15, %v231_v14  ;;  %v233_v20 = vld [vmem:[#allocation10 + $0x30] sm:$0xff] }
  0xef   :  { %1549 = vmatpush3.bf16.msra.mxu1 %v1548_v9  ;;  %1526 = vmatprep.subr.bf16.mxu0 %v2155_v0  ;;  %v1554_v19 = vpack.c.bf16 %v215_v17, %v214_v16  ;;  %v234_v21 = vld [vmem:[#allocation10 + $0x38] sm:$0xff]  ;;  %v216_v22 = vld [vmem:[#allocation8 + $0x30] sm:$0xff]  ;;  %v235_v26 = vld [vmem:[#allocation10 + $0x40] sm:$0xff] }
  0xf0   :  { %1550 = vmatprep.subr.bf16.mxu1 %v2155_v0  ;;  %v217_v23 = vld [vmem:[#allocation8 + $0x38] sm:$0xff]  ;;  %v1533_v24 = vpack.c.bf16 %v234_v21, %v233_v20  ;;  %v236_v27 = vld [vmem:[#allocation10 + $0x48] sm:$0xff]  ;;  %v218_v28 = vld [vmem:[#allocation8 + $0x40] sm:$0xff] }
  0xf1   :  { %v1557_v25 = vpack.c.bf16 %v217_v23, %v216_v22  ;;  %v219_v29 = vld [vmem:[#allocation8 + $0x48] sm:$0xff]  ;;  %v1536_v30 = vpack.c.bf16 %v236_v27, %v235_v26  ;;  %v237_v32 = vld [vmem:[#allocation10 + $0x50] sm:$0xff]  ;;  %v238_v33 = vld [vmem:[#allocation10 + $0x58] sm:$0xff] }
  0xf2   :  { %1528 = vmatpush3.bf16.msra.mxu0 %v1527_v12  ;;  %v1560_v31 = vpack.c.bf16 %v219_v29, %v218_v28  ;;  %v220_v34 = vld [vmem:[#allocation8 + $0x50] sm:$0xff]  ;;  %v221_v35 = vld [vmem:[#allocation8 + $0x58] sm:$0xff]  ;;  %v1539_v36 = vpack.c.bf16 %v238_v33, %v237_v32  ;;  %v239_v38 = vld [vmem:[#allocation10 + $0x60] sm:$0xff] }
  0xf3   :  { %1552 = vmatpush3.bf16.msra.mxu1 %v1551_v13  ;;  %1529 = vmatprep.subr.bf16.mxu0 %v2155_v0  ;;  %v1563_v37 = vpack.c.bf16 %v221_v35, %v220_v34  ;;  %v240_v39 = vld [vmem:[#allocation10 + $0x68] sm:$0xff]  ;;  %v222_v40 = vld [vmem:[#allocation8 + $0x60] sm:$0xff]  ;;  %v241_v44 = vld [vmem:[#allocation10 + $0x70] sm:$0xff] }
  0xf4   :  { %1553 = vmatprep.subr.bf16.mxu1 %v2155_v0  ;;  %v223_v41 = vld [vmem:[#allocation8 + $0x68] sm:$0xff]  ;;  %v1542_v42 = vpack.c.bf16 %v240_v39, %v239_v38  ;;  %v242_v45 = vld [vmem:[#allocation10 + $0x78] sm:$0xff]  ;;  %v224_v46 = vld [vmem:[#allocation8 + $0x70] sm:$0xff] }
  0xf5   :  { %v1566_v43 = vpack.c.bf16 %v223_v41, %v222_v40  ;;  %v225_v47 = vld [vmem:[#allocation8 + $0x78] sm:$0xff]  ;;  %v1545_v48 = vpack.c.bf16 %v242_v45, %v241_v44  ;;  %v392_v50 = vld [vmem:[#allocation11] sm:$0xff]  ;;  %v393_v51 = vld [vmem:[#allocation11 + $0x8] sm:$0xff] }
  0xf6   :  { %1531 = vmatpush3.bf16.msra.mxu0 %v1530_v18  ;;  %v1569_v49 = vpack.c.bf16 %v225_v47, %v224_v46  ;;  %v2452_v52 = vld [vmem:[#allocation5] sm:$0xff]  ;;  %v1572_v53 = vpack.c.bf16 %v393_v51, %v392_v50  ;;  %v209_v54 = vld [vmem:[#allocation2] sm:$0xff]  ;;  %v394_v55 = vld [vmem:[#allocation11 + $0x10] sm:$0xff] }
  0xf7   :  { %1555 = vmatpush3.bf16.msra.mxu1 %v1554_v19  ;;  %1532 = vmatprep.subr.bf16.mxu0 %v2155_v0  ;;  %v395_v56 = vld [vmem:[#allocation11 + $0x18] sm:$0xff]  ;;  %v396_v58 = vld [vmem:[#allocation11 + $0x20] sm:$0xff]  ;;  %v397_v59 = vld [vmem:[#allocation11 + $0x28] sm:$0xff] }
  0xf8   :  { %1556 = vmatprep.subr.bf16.mxu1 %v2155_v0  ;;  %v1575_v57 = vpack.c.bf16 %v395_v56, %v394_v55  ;;  %v1578_v60 = vpack.c.bf16 %v397_v59, %v396_v58  ;;  %v398_v61 = vld [vmem:[#allocation11 + $0x30] sm:$0xff]  ;;  %v399_v62 = vld [vmem:[#allocation11 + $0x38] sm:$0xff]  ;;  %v400_v2 = vld [vmem:[#allocation11 + $0x40] sm:$0xff] }
  0xf9   :  { %v1581_v63 = vpack.c.bf16 %v399_v62, %v398_v61  ;;  %v401_v3 = vld [vmem:[#allocation11 + $0x48] sm:$0xff]  ;;  %v402_v5 = vld [vmem:[#allocation11 + $0x50] sm:$0xff]  ;;  %v403_v6 = vld [vmem:[#allocation11 + $0x58] sm:$0xff] }
  0xfa   :  { %1534 = vmatpush3.bf16.msra.mxu0 %v1533_v24  ;;  %v1584_v4 = vpack.c.bf16 %v401_v3, %v400_v2  ;;  %v1587_v7 = vpack.c.bf16 %v403_v6, %v402_v5  ;;  %v404_v8 = vld [vmem:[#allocation11 + $0x60] sm:$0xff]  ;;  %v405_v9 = vld [vmem:[#allocation11 + $0x68] sm:$0xff]  ;;  %v406_v11 = vld [vmem:[#allocation11 + $0x70] sm:$0xff] }
  0xfb   :  { %1558 = vmatpush3.bf16.msra.mxu1 %v1557_v25  ;;  %1535 = vmatprep.subr.bf16.mxu0 %v2155_v0  ;;  %v1590_v10 = vpack.c.bf16 %v405_v9, %v404_v8  ;;  %v407_v12 = vld [vmem:[#allocation11 + $0x78] sm:$0xff]  ;;  %v487_v14 = vld [vmem:[#allocation13 + $0x8] sm:$0xff]  ;;  %v486_v16 = vld [vmem:[#allocation13] sm:$0xff] }
  0xfc   :  { %1559 = vmatprep.subr.bf16.mxu1 %v2155_v0  ;;  %v1593_v13 = vpack.c.bf16 %v407_v12, %v406_v11  ;;  %v489_v15 = vld [vmem:[#allocation13 + $0x18] sm:$0xff]  ;;  %v488_v18 = vld [vmem:[#allocation13 + $0x10] sm:$0xff]  ;;  %v491_v19 = vld [vmem:[#allocation13 + $0x28] sm:$0xff] }
  0xfd   :  { %v1595_v17 = vpack.c.bf16 %v489_v15, %v487_v14  ;;  %v493_v20 = vld [vmem:[#allocation13 + $0x38] sm:$0xff]  ;;  %v1597_v21 = vpack.c.bf16 %v488_v18, %v486_v16  ;;  %v490_v23 = vld [vmem:[#allocation13 + $0x20] sm:$0xff]  ;;  %v492_v24 = vld [vmem:[#allocation13 + $0x30] sm:$0xff] }
  0xfe   :  { %1537 = vmatpush3.bf16.msra.mxu0 %v1536_v30  ;;  %v1599_v22 = vpack.c.bf16 %v493_v20, %v491_v19  ;;  %v495_v25 = vld [vmem:[#allocation13 + $0x48] sm:$0xff]  ;;  %v497_v26 = vld [vmem:[#allocation13 + $0x58] sm:$0xff]  ;;  %v1601_v27 = vpack.c.bf16 %v492_v24, %v490_v23  ;;  %v494_v29 = vld [vmem:[#allocation13 + $0x40] sm:$0xff] }
  0xff   :  { %1561 = vmatpush3.bf16.msra.mxu1 %v1560_v31  ;;  %1538 = vmatprep.subr.bf16.mxu0 %v2155_v0  ;;  %v1603_v28 = vpack.c.bf16 %v497_v26, %v495_v25  ;;  %v496_v30 = vld [vmem:[#allocation13 + $0x50] sm:$0xff]  ;;  %v499_v31 = vld [vmem:[#allocation13 + $0x68] sm:$0xff]  ;;  %v501_v32 = vld [vmem:[#allocation13 + $0x78] sm:$0xff] }
 0x100   :  { %1562 = vmatprep.subr.bf16.mxu1 %v2155_v0  ;;  %v1605_v33 = vpack.c.bf16 %v496_v30, %v494_v29  ;;  %v1607_v34 = vpack.c.bf16 %v501_v32, %v499_v31  ;;  %v498_v35 = vld [vmem:[#allocation13 + $0x60] sm:$0xff]  ;;  %v505_v38 = vld [vmem:[#allocation13 + $0x98] sm:$0xff]  ;;  %v512_v55 = vld [vmem:[#allocation13 + $0xd0] sm:$0xff] }
 0x101   :  { %v502_v41 = vld [vmem:[#allocation13 + $0x80] sm:$0xff]  ;;  %v509_v44 = vld [vmem:[#allocation13 + $0xb8] sm:$0xff]  ;;  %v515_v3 = vld [vmem:[#allocation13 + $0xe8] sm:$0xff] }
 0x102   :  { %1540 = vmatpush3.bf16.msra.mxu0 %v1539_v36  ;;  %v500_v36 = vld [vmem:[#allocation13 + $0x70] sm:$0xff]  ;;  %v506_v47 = vld [vmem:[#allocation13 + $0xa0] sm:$0xff]  ;;  %v513_v50 = vld [vmem:[#allocation13 + $0xd8] sm:$0xff] }
 0x103   :  { %1564 = vmatpush3.bf16.msra.mxu1 %v1563_v37  ;;  %1541 = vmatprep.subr.bf16.mxu0 %v2155_v0  ;;  %v503_v37 = vld [vmem:[#allocation13 + $0x88] sm:$0xff]  ;;  %v1609_v39 = vpack.c.bf16 %v500_v36, %v498_v35  ;;  %v1191_v59 = vld [vmem:[%s2669_s23] ss:$0 sm:$0xff]  ;;  %v514_v6 = vld [vmem:[#allocation13 + $0xe0] sm:$0xff] }
 0x104   :  { %1565 = vmatprep.subr.bf16.mxu1 %v2155_v0  ;;  %v1611_v40 = vpack.c.bf16 %v505_v38, %v503_v37  ;;  %v1192_v9 = vld [vmem:[%s2636_s7] ss:$0 sm:$0xff]  ;;  %v632_v14 = vld [vmem:[#allocation16] sm:$0xff]  ;;  %v633_v15 = vld [vmem:[#allocation16 + $0x8] sm:$0xff] }
 0x105   :  { %v1628_v16 = vpack.c.bf16 %v633_v15, %v632_v14  ;;  %v726_v18 = vld [vmem:[#allocation14 + $0x8] sm:$0xff]  ;;  %v634_v20 = vld [vmem:[#allocation16 + $0x10] sm:$0xff]  ;;  %v728_v24 = vld [vmem:[#allocation14 + $0x18] sm:$0xff] }
 0x106   :  { %1543 = vmatpush3.bf16.msra.mxu0 %v1542_v42  ;;  %v504_v42 = vld [vmem:[#allocation13 + $0x90] sm:$0xff]  ;;  %v636_v26 = vld [vmem:[#allocation16 + $0x20] sm:$0xff]  ;;  %v730_v30 = vld [vmem:[#allocation14 + $0x28] sm:$0xff] }
 0x107   :  { %1567 = vmatpush3.bf16.msra.mxu1 %v1566_v43  ;;  %1544 = vmatprep.subr.bf16.mxu0 %v2155_v0  ;;  %v507_v43 = vld [vmem:[#allocation13 + $0xa8] sm:$0xff]  ;;  %v1613_v45 = vpack.c.bf16 %v504_v42, %v502_v41  ;;  %v727_v23 = vld [vmem:[#allocation14 + $0x10] sm:$0xff]  ;;  %v729_v29 = vld [vmem:[#allocation14 + $0x20] sm:$0xff] }
 0x108   :  { %1568 = vmatprep.subr.bf16.mxu1 %v2155_v0  ;;  %v1615_v46 = vpack.c.bf16 %v509_v44, %v507_v43  ;;  %v1655_v25 = vpack.c.bf16 %v728_v24, %v727_v23  ;;  %v1658_v31 = vpack.c.bf16 %v730_v30, %v729_v29  ;;  %v638_v32 = vld [vmem:[#allocation16 + $0x30] sm:$0xff]  ;;  %v732_v36 = vld [vmem:[#allocation14 + $0x38] sm:$0xff]  ;;  %v640_v38 = vld [vmem:[#allocation16 + $0x40] sm:$0xff] }
 0x109   :  { %v731_v35 = vld [vmem:[#allocation14 + $0x30] sm:$0xff]  ;;  %v733_v41 = vld [vmem:[#allocation14 + $0x40] sm:$0xff]  ;;  %v734_v42 = vld [vmem:[#allocation14 + $0x48] sm:$0xff] }
 0x10a   :  { %1546 = vmatpush3.bf16.msra.mxu0 %v1545_v48  ;;  %v508_v48 = vld [vmem:[#allocation13 + $0xb0] sm:$0xff]  ;;  %v1661_v37 = vpack.c.bf16 %v732_v36, %v731_v35  ;;  %v1664_v43 = vpack.c.bf16 %v734_v42, %v733_v41 }
 0x10b   :  { %1570 = vmatpush3.bf16.msra.mxu1 %v1569_v49  ;;  %1571 = vmatprep.subr.bf16.mxu0 %v2155_v0  ;;  %v511_v49 = vld [vmem:[#allocation13 + $0xc8] sm:$0xff]  ;;  %v1617_v51 = vpack.c.bf16 %v508_v48, %v506_v47  ;;  %v642_v44 = vld [vmem:[#allocation16 + $0x50] sm:$0xff]  ;;  %v736_v48 = vld [vmem:[#allocation14 + $0x58] sm:$0xff] }
 0x10c   :  { %1596 = vmatprep.subr.bf16.mxu1 %v1595_v17  ;;  %v725_v17 = vld [vmem:[#allocation14] sm:$0xff]  ;;  %v735_v47 = vld [vmem:[#allocation14 + $0x50] sm:$0xff] }
 0x10d   :  { %1334 = vmatmul.mubr.f32.vlgmr.msra.gmra.mrb[0].mxu0 %v2452_v52  ;;  %v1652_v19 = vpack.c.bf16 %v726_v18, %v725_v17  ;;  %v834_v15 = vld [vmem:[#allocation17 + $0x50] sm:$0xff]  ;;  %v520_v18 = vlaneseq }
 0x10e   :  { %1369 = vmatmul.mubr.f32.vlgmr.msra.gmra.mrb[0].mxu1 %v209_v54  ;;  %1573 = vmatpush3.bf16.msra.mxu0 %v1572_v53  ;;  %v1619_v53 = vpack.c.bf16 %v513_v50, %v511_v49  ;;  %v510_v54 = vld [vmem:[#allocation13 + $0xc0] sm:$0xff]  ;;  %v1667_v49 = vpack.c.bf16 %v736_v48, %v735_v47  ;;  %v621_v47 = vld [vmem:[#allocation7 + $0x10] sm:$0xff] }
 0x10f   :  { %1574 = vmatprep.subr.bf16.mxu0 %v2155_v0  ;;  %1403 = vmatprep.mubr.msk.f32.mxu0 %vm2156_vm0, %v2157_v1  ;;  %v1621_v56 = vpack.c.bf16 %v512_v55, %v510_v54  ;;  %v644_v50 = vld [vmem:[#allocation16 + $0x60] sm:$0xff]  ;;  %v738_v55 = vld [vmem:[#allocation14 + $0x68] sm:$0xff] }
 0x110   :  { %594 = vmatprep.mubr.f32.mxu1 %v2157_v1  ;;  %1598 = vmatpush1.bf16.msra.mxu1 %v1597_v21  ;;  %v635_v21 = vld [vmem:[#allocation16 + $0x18] sm:$0xff]  ;;  %v737_v54 = vld [vmem:[#allocation14 + $0x60] sm:$0xff] }
 0x111   :  { %1600 = vmatprep.subr.bf16.mxu1 %v1599_v22  ;;  %v1631_v22 = vpack.c.bf16 %v635_v21, %v634_v20  ;;  %v518_v21 = vld [vmem:[%s2638_s9] sm:$0x3] }
 0x112   :  { %1576 = vmatpush3.bf16.msra.mxu0 %v1575_v57 }
 0x113   :  { %1577 = vmatprep.subr.bf16.mxu0 %v2155_v0 }
 0x114   :  { %1602 = vmatpush1.bf16.msra.mxu1 %v1601_v27  ;;  %v637_v27 = vld [vmem:[#allocation16 + $0x28] sm:$0xff] }
 0x115   :  { %1604 = vmatprep.subr.bf16.mxu1 %v1603_v28  ;;  %v1634_v28 = vpack.c.bf16 %v637_v27, %v636_v26  ;;  %v837_v26 = vld [vmem:[#allocation17 + $0x68] sm:$0xff] }
 0x116   :  { %1579 = vmatpush3.bf16.msra.mxu0 %v1578_v60 }
 0x117   :  { %1580 = vmatprep.subr.bf16.mxu0 %v2155_v0 }
 0x118   :  { %1606 = vmatpush1.bf16.msra.mxu1 %v1605_v33  ;;  %v639_v33 = vld [vmem:[#allocation16 + $0x38] sm:$0xff] }
 0x119   :  { %1608 = vmatprep.subr.bf16.mxu1 %v1607_v34  ;;  %v1637_v34 = vpack.c.bf16 %v639_v33, %v638_v32 }
 0x11a   :  { %1582 = vmatpush3.bf16.msra.mxu0 %v1581_v63 }
 0x11b   :  { %1583 = vmatprep.subr.bf16.mxu0 %v2155_v0 }
 0x11c   :  { %1610 = vmatpush1.bf16.msra.mxu1 %v1609_v39  ;;  %v641_v39 = vld [vmem:[#allocation16 + $0x48] sm:$0xff] }
 0x11d   :  { %1612 = vmatprep.subr.bf16.mxu1 %v1611_v40  ;;  %v1640_v40 = vpack.c.bf16 %v641_v39, %v640_v38 }
 0x11e   :  { %1585 = vmatpush3.bf16.msra.mxu0 %v1584_v4  ;;  %v517_v4 = vld [vmem:[#allocation13 + $0xf8] sm:$0xff] }
 0x11f   :  { %1586 = vmatprep.subr.bf16.mxu0 %v2155_v0  ;;  %v1623_v5 = vpack.c.bf16 %v517_v4, %v515_v3  ;;  %v826_v3 = vld [vmem:[#allocation17 + $0x10] sm:$0xff] }
 0x120   :  { %1614 = vmatpush1.bf16.msra.mxu1 %v1613_v45  ;;  %v643_v45 = vld [vmem:[#allocation16 + $0x58] sm:$0xff] }
 0x121   :  { %1616 = vmatprep.subr.bf16.mxu1 %v1615_v46  ;;  %v1643_v46 = vpack.c.bf16 %v643_v45, %v642_v44 }
 0x122   :  { %1588 = vmatpush3.bf16.msra.mxu0 %v1587_v7  ;;  %v516_v7 = vld [vmem:[#allocation13 + $0xf0] sm:$0xff] }
 0x123   :  { %1589 = vmatprep.subr.bf16.mxu0 %v2155_v0  ;;  %v1625_v8 = vpack.c.bf16 %v516_v7, %v514_v6  ;;  %v828_v7 = vld [vmem:[#allocation17 + $0x20] sm:$0xff] }
 0x124   :  { %1618 = vmatpush1.bf16.msra.mxu1 %v1617_v51  ;;  %v645_v51 = vld [vmem:[#allocation16 + $0x68] sm:$0xff] }
 0x125   :  { %1620 = vmatprep.subr.bf16.mxu1 %v1619_v53  ;;  %v1646_v53 = vpack.c.bf16 %v645_v51, %v644_v50 }
 0x126   :  { %1591 = vmatpush3.bf16.msra.mxu0 %v1590_v10 }
 0x127   :  { %1592 = vmatprep.subr.bf16.mxu0 %v2155_v0 }
 0x128   :  { %1622 = vmatpush1.bf16.msra.mxu1 %v1621_v56  ;;  %v1670_v56 = vpack.c.bf16 %v738_v55, %v737_v54 }
 0x129   :  { %1624 = vmatprep.subr.bf16.mxu1 %v1623_v5  ;;  %v827_v5 = vld [vmem:[#allocation17 + $0x18] sm:$0xff] }
 0x12a   :  { %1594 = vmatpush3.bf16.msra.mxu0 %v1593_v13  ;;  %v1679_v6 = vpack.c.bf16 %v827_v5, %v826_v3  ;;  %v932_v3 = vld [vmem:[#allocation19 + $0x10] sm:$0xff]  ;;  %v937_v5 = vld [vmem:[#allocation19 + $0x38] sm:$0xff] }
 0x12b   :  { %1627 = vmatprep.subr.bf16.mxu0 %v2155_v0 }
 0x12c   :  { %1626 = vmatpush1.bf16.msra.mxu1 %v1625_v8  ;;  %v829_v8 = vld [vmem:[#allocation17 + $0x28] sm:$0xff] }
 0x12d   :  { %1651 = vmatprep.subr.bf16.mxu1 %v2155_v0 }
 0x1e0   :  { %v309_v57 = vpop.f32.mrb[0].mxu0 }
 0x1e1   :  { %v379_v58 = vpop.f32.mrb[0].mxu1  ;;  %v1335_v60 = vpop.f32.mrb[1].mxu0 }
 0x1e2   :  { %v380_v61 = vadd.f32 %v379_v58, %v309_v57  ;;  %v1370_v62 = vpop.f32.mrb[1].mxu1  ;;  %v646_v57 = vld [vmem:[#allocation16 + $0x70] sm:$0xff]  ;;  %v647_v58 = vld [vmem:[#allocation16 + $0x78] sm:$0xff] }
 0x1e3   :  { %v739_v60 = vld [vmem:[#allocation14 + $0x70] sm:$0xff] }
 0x1e4   :  { %v390_v63 = vadd.f32 %v1191_v59, %v380_v61  ;;  %v1649_v59 = vpack.c.bf16 %v647_v58, %v646_v57  ;;  %v740_v61 = vld [vmem:[#allocation14 + $0x78] sm:$0xff]  ;;  %v838_v58 = vld [vmem:[#allocation17 + $0x70] sm:$0xff] }
 0x1e5   :  { %v1673_v62 = vpack.c.bf16 %v740_v61, %v739_v60  ;;  %v931_v61 = vld [vmem:[#allocation19 + $0x8] sm:$0xff] }
 0x1e6   :  { %v391_v2 = vmax.f32 %v390_v63, 0.0  ;;  %v824_v63 = vld [vmem:[#allocation17] sm:$0xff] }
 0x1e8   :  { %1404 = vmatmul.mubr.f32.vlgmr.msra.gmra.mrb[2].mxu0 %v391_v2  ;;  %v825_v2 = vld [vmem:[#allocation17 + $0x8] sm:$0xff] }
 0x1e9   :  { %1438 = vmatprep.mubr.msk.f32.mxu0 %vm2156_vm0, %v2157_v1  ;;  %1629 = vmatpush3.bf16.msra.mxu0 %v1628_v16  ;;  %v1676_v4 = vpack.c.bf16 %v825_v2, %v824_v63  ;;  %v835_v16 = vld [vmem:[#allocation17 + $0x58] sm:$0xff]  ;;  %v930_v63 = vld [vmem:[#allocation19] sm:$0xff] }
 0x1ea   :  { %1630 = vmatprep.subr.bf16.mxu0 %v2155_v0  ;;  %v1691_v17 = vpack.c.bf16 %v835_v16, %v834_v15  ;;  %v943_v15 = vld [vmem:[#allocation19 + $0x68] sm:$0xff]  ;;  %v945_v16 = vld [vmem:[#allocation19 + $0x78] sm:$0xff] }
 0x1ed   :  { %1632 = vmatpush3.bf16.msra.mxu0 %v1631_v22 }
 0x1ee   :  { %1633 = vmatprep.subr.bf16.mxu0 %v2155_v0 }
 0x1f1   :  { %1635 = vmatpush3.bf16.msra.mxu0 %v1634_v28 }
 0x1f2   :  { %1636 = vmatprep.subr.bf16.mxu0 %v2155_v0 }
 0x1f5   :  { %1638 = vmatpush3.bf16.msra.mxu0 %v1637_v34 }
 0x1f6   :  { %1639 = vmatprep.subr.bf16.mxu0 %v2155_v0 }
 0x1f9   :  { %1641 = vmatpush3.bf16.msra.mxu0 %v1640_v40 }
 0x1fa   :  { %1642 = vmatprep.subr.bf16.mxu0 %v2155_v0 }
 0x1fd   :  { %1644 = vmatpush3.bf16.msra.mxu0 %v1643_v46  ;;  %v619_v46 = vld [vmem:[#allocation7] sm:$0xff] }
 0x1fe   :  { %1645 = vmatprep.subr.bf16.mxu0 %v2155_v0 }
 0x201   :  { %1647 = vmatpush3.bf16.msra.mxu0 %v1646_v53 }
 0x202   :  { %1648 = vmatprep.subr.bf16.mxu0 %v2155_v0 }
 0x205   :  { %1650 = vmatpush3.bf16.msra.mxu0 %v1649_v59  ;;  %v839_v59 = vld [vmem:[#allocation17 + $0x78] sm:$0xff] }
 0x206   :  { %1675 = vmatprep.subr.bf16.mxu0 %v2155_v0  ;;  %v1697_v60 = vpack.c.bf16 %v839_v59, %v838_v58  ;;  %v961_v58 = vld [vmem:[#allocation19 + $0xf8] sm:$0xff] }
 0x208   :  { %1439 = vmatmul.mubr.f32.vlgmr.msra.gmra.mrb[4].mxu0 %v2452_v52  ;;  %v830_v52 = vld [vmem:[#allocation17 + $0x30] sm:$0xff] }
 0x209   :  { %1514 = vmatprep.mubr.msk.f32.mxu0 %vm2156_vm0, %v2157_v1  ;;  %1677 = vmatpush3.bf16.msra.mxu0 %v1676_v4  ;;  %v935_v4 = vld [vmem:[#allocation19 + $0x28] sm:$0xff] }
 0x20a   :  { %1678 = vmatprep.subr.bf16.mxu0 %v2155_v0 }
 0x20d   :  { %1680 = vmatpush3.bf16.msra.mxu0 %v1679_v6  ;;  %v1701_v6 = vpack.c.bf16 %v932_v3, %v930_v63  ;;  %v1194_v63 = vld [vmem:[%s2643_s14] ss:$0 sm:$0xff]  ;;  %s2158_s14 = smov [#allocation21]  }
 0x20e   :  { %1681 = vmatprep.subr.bf16.mxu0 %v2155_v0  ;;  %s1127_s21 = sshll.u32 %s2158_s14, 4  ;;  %s1128_s21 = int_to_ptr.vmem [resolvable:$true] %s1127_s21 }
 0x20f   :  { %s2012_s24 = scalar_lea.vmem %s1128_s21, 128  ;;  %p2017_p5 = scmp.lt.s32.totalorder %s1128_s21, %s1128_s21 }
 0x210   :  { %p2013_p4 = scmp.ne.s32.totalorder %s1128_s21, %s2012_s24  ;;  %p2018_p6 = scmp.lt.s32.totalorder %s2012_s24, %s2012_s24 }
 0x212   :  { %p2019_p7 = por %p2018_p6, %p2017_p5 }
 0x214   :  { %p2020_p8 = pnand %p2019_p7, %p2013_p4 }
 0x2bb   :  { %v481_v10 = vpop.f32.mrb[2].mxu0 }
 0x2bc   :  { %v482_v11 = vadd.f32 %v1192_v9, %v481_v10  ;;  %v1405_v12 = vpop.f32.mrb[3].mxu0  ;;  %v1682_v9 = vpack.c.bf16 %v829_v8, %v828_v7  ;;  %v831_v10 = vld [vmem:[#allocation17 + $0x38] sm:$0xff]  ;;  %v1703_v7 = vpack.c.bf16 %v937_v5, %v935_v4  ;;  %v934_v8 = vld [vmem:[#allocation19 + $0x20] sm:$0xff] }
 0x2bd   :  { %v832_v12 = vld [vmem:[#allocation17 + $0x40] sm:$0xff] }
 0x2be   :  { %v485_v13 = vmax.f32 %v482_v11, 0.0  ;;  %1683 = vmatpush3.bf16.msra.mxu0 %v1682_v9  ;;  %v1685_v11 = vpack.c.bf16 %v831_v10, %v830_v52  ;;  %v936_v9 = vld [vmem:[#allocation19 + $0x30] sm:$0xff]  ;;  %v939_v52 = vld [vmem:[#allocation19 + $0x48] sm:$0xff]  ;;  %v941_v10 = vld [vmem:[#allocation19 + $0x58] sm:$0xff] }
 0x2bf   :  { %1684 = vmatprep.subr.bf16.mxu0 %v2155_v0 }
 0x2c0   :  { %595 = vmatmul.mubr.f32.vlgmr.msra.gmra.mrb[2].mxu1 %v485_v13  ;;  %v833_v13 = vld [vmem:[#allocation17 + $0x48] sm:$0xff] }
 0x2c1   :  { %1473 = vmatprep.mubr.msk.f32.mxu1 %vm2156_vm0, %v2157_v1  ;;  %1653 = vmatpush3.bf16.msra.mxu1 %v1652_v19  ;;  %v1688_v14 = vpack.c.bf16 %v833_v13, %v832_v12  ;;  %v2502_v19 = vshrl.u32 %v520_v18, 7  ;;  %v1707_v12 = vpack.c.bf16 %v941_v10, %v939_v52  ;;  %v938_v13 = vld [vmem:[#allocation19 + $0x40] sm:$0xff]  ;;  %v1711_v18 = vpack.c.bf16 %v945_v16, %v943_v15 }
 0x2c2   :  { %1654 = vmatprep.subr.bf16.mxu1 %v2155_v0  ;;  %1686 = vmatpush3.bf16.msra.mxu0 %v1685_v11  ;;  %v1705_v11 = vpack.c.bf16 %v936_v9, %v934_v8 }
 0x2c3   :  { %1687 = vmatprep.subr.bf16.mxu0 %v2155_v0  ;;  %v522_v20 = vsub.s32 0, %v2502_v19  ;;  %v526_v22 = vsub.s32 1, %v2502_v19 }
 0x2c5   :  { %1656 = vmatpush3.bf16.msra.mxu1 %v1655_v25  ;;  %v523_v23 = vrot.slane %v518_v21, %v522_v20  ;;  %v527_v24 = vrot.slane %v518_v21, %v526_v22  ;;  %v836_v25 = vld [vmem:[#allocation17 + $0x60] sm:$0xff] }
 0x2c6   :  { %1657 = vmatprep.subr.bf16.mxu1 %v2155_v0  ;;  %1689 = vmatpush3.bf16.msra.mxu0 %v1688_v14  ;;  %v1694_v27 = vpack.c.bf16 %v837_v26, %v836_v25  ;;  %v940_v14 = vld [vmem:[#allocation19 + $0x50] sm:$0xff]  ;;  %v942_v21 = vld [vmem:[#allocation19 + $0x60] sm:$0xff]  ;;  %v949_v25 = vld [vmem:[#allocation19 + $0x98] sm:$0xff] }
 0x2c7   :  { %1690 = vmatprep.subr.bf16.mxu0 %v2155_v0 }
 0x2c9   :  { %1659 = vmatpush3.bf16.msra.mxu1 %v1658_v31 }
 0x2ca   :  { %1660 = vmatprep.subr.bf16.mxu1 %v2155_v0  ;;  %1692 = vmatpush3.bf16.msra.mxu0 %v1691_v17  ;;  %v1709_v17 = vpack.c.bf16 %v940_v14, %v938_v13 }
 0x2cb   :  { %1693 = vmatprep.subr.bf16.mxu0 %v2155_v0 }
 0x2cd   :  { %1662 = vmatpush3.bf16.msra.mxu1 %v1661_v37 }
 0x2ce   :  { %1663 = vmatprep.subr.bf16.mxu1 %v2155_v0  ;;  %1695 = vmatpush3.bf16.msra.mxu0 %v1694_v27 }
 0x2cf   :  { %1696 = vmatprep.subr.bf16.mxu0 %v2155_v0 }
 0x2d1   :  { %1665 = vmatpush3.bf16.msra.mxu1 %v1664_v43 }
 0x2d2   :  { %1666 = vmatprep.subr.bf16.mxu1 %v2155_v0  ;;  %1698 = vmatpush3.bf16.msra.mxu0 %v1697_v60  ;;  %v958_v60 = vld [vmem:[#allocation19 + $0xe0] sm:$0xff] }
 0x2d5   :  { %1668 = vmatpush3.bf16.msra.mxu1 %v1667_v49 }
 0x2d6   :  { %1669 = vmatprep.subr.bf16.mxu1 %v2155_v0 }
 0x2d9   :  { %1671 = vmatpush3.bf16.msra.mxu1 %v1670_v56 }
 0x2da   :  { %1672 = vmatprep.subr.bf16.mxu1 %v2155_v0  ;;  %v620_v0 = vld [vmem:[#allocation7 + $0x8] sm:$0xff] }
 0x2db   :  { %v2519_v56 = vpop.f32.mrb[4].mxu0 }
 0x2dc   :  { %v1440_v57 = vpop.f32.mrb[5].mxu0 }
 0x2dd   :  { %1674 = vmatpush3.bf16.msra.mxu1 %v1673_v62  ;;  %v933_v62 = vld [vmem:[#allocation19 + $0x18] sm:$0xff]  ;;  %v959_v57 = vld [vmem:[#allocation19 + $0xe8] sm:$0xff] }
 0x2de   :  { %v1699_v2 = vpack.c.bf16 %v933_v62, %v931_v61  ;;  %v1727_v59 = vpack.c.bf16 %v961_v58, %v959_v57  ;;  %v960_v61 = vld [vmem:[#allocation19 + $0xf0] sm:$0xff] }
 0x2df   :  { %v1729_v62 = vpack.c.bf16 %v960_v61, %v958_v60 }
 0x2e0   :  { %1700 = vmatprep.subr.bf16.mxu1 %v1699_v2 }
 0x393   :  { %v596_v28 = vpop.f32.mrb[2].mxu1 }
 0x394   :  { %v597_v29 = vadd.f32 %v596_v28, %v523_v23  ;;  %v598_v30 = vpop.f32.mrb[3].mxu1  ;;  %v944_v23 = vld [vmem:[#allocation19 + $0x70] sm:$0xff]  ;;  %v946_v28 = vld [vmem:[#allocation19 + $0x80] sm:$0xff] }
 0x395   :  { %v599_v31 = vadd.f32 %v598_v30, %v527_v24  ;;  %v947_v24 = vld [vmem:[#allocation19 + $0x88] sm:$0xff]  ;;  %v1713_v26 = vpack.c.bf16 %v944_v23, %v942_v21 }
 0x396   :  { %617 = vst [vmem:[#allocation20] sm:$0xff] %v597_v29  ;;  %v1715_v27 = vpack.c.bf16 %v949_v25, %v947_v24  ;;  %v951_v30 = vld [vmem:[#allocation19 + $0xa8] sm:$0xff] }
 0x397   :  { %v602_v32 = vand.u32 2147483647, %v599_v31  ;;  %v601_v43 = vmax.f32 %v599_v31, 0.0  ;;  %v953_v31 = vld [vmem:[#allocation19 + $0xb8] sm:$0xff] }
 0x399   :  { %v603_v33 = vsub.f32 0.0, %v602_v32 }
 0x39b   :  { %v604_v34 = vmul.f32 1.442695, %v603_v33  ;;  %v1719_v33 = vpack.c.bf16 %v953_v31, %v951_v30 }
 0x39d   :  { %1754 = vpow2.f32 %v604_v34  ;;  %v950_v34 = vld [vmem:[#allocation19 + $0xa0] sm:$0xff] }
 0x3a7   :  { %v1755_v35 = vpop.eup %1754 }
 0x3a8   :  { %v606_v36 = vadd.f32 1.0, %v1755_v35  ;;  %v609_v37 = vmul.f32 -0.5, %v1755_v35  ;;  %v612_v39 = vand.u32 2147483647, %v1755_v35 }
 0x3aa   :  { %1756 = vlog2.f32 %v606_v36  ;;  %v610_v38 = vadd.f32 1.0, %v609_v37  ;;  %vm613_vm1 = vcmp.lt.f32.partialorder %v612_v39, 0.0004427343  ;;  %v955_v36 = vld [vmem:[#allocation19 + $0xc8] sm:$0xff]  ;;  %v957_v37 = vld [vmem:[#allocation19 + $0xd8] sm:$0xff] }
 0x3ab   :  { %v1723_v39 = vpack.c.bf16 %v957_v37, %v955_v36 }
 0x3ac   :  { %v611_v42 = vmul.f32 %v1755_v35, %v610_v38  ;;  %v952_v35 = vld [vmem:[#allocation19 + $0xb0] sm:$0xff] }
 0x3ad   :  { %v1721_v38 = vpack.c.bf16 %v952_v35, %v950_v34 }
 0x3b4   :  { %v1757_v40 = vpop.eup %1756 }
 0x3b5   :  { %v608_v41 = vmul.f32 0.6931472, %v1757_v40  ;;  %v954_v40 = vld [vmem:[#allocation19 + $0xc0] sm:$0xff] }
 0x3b7   :  { %v614_v44 = vsel %vm613_vm1, %v611_v42, %v608_v41  ;;  %v956_v41 = vld [vmem:[#allocation19 + $0xd0] sm:$0xff] }
 0x3b8   :  { %v615_v45 = vadd.f32 %v614_v44, %v601_v43  ;;  %v1725_v42 = vpack.c.bf16 %v956_v41, %v954_v40  ;;  %v1193_v43 = vld [vmem:[%s2641_s12] ss:$0 sm:$0xff] }
 0x3b9   :  { %v722_v44 = vadd.f32 %v1193_v43, %v2519_v56 }
 0x3ba   :  { %v616_v48 = vadd.f32 1e-06, %v615_v45 }
 0x3bc   :  { %618 = vst [vmem:[#allocation21] sm:$0xff] %v616_v48  ;;  %v622_v49 = vmul.f32 %v619_v46, %v616_v48  ;;  %v623_v50 = vmul.f32 %v620_v0, %v616_v48  ;;  %v624_v51 = vmul.f32 %v621_v47, %v616_v48 }
 0x3be   :  { %v625_v53 = vadd.f32 %v622_v49, %v597_v29  ;;  %v626_v54 = vadd.f32 %v623_v50, %v597_v29  ;;  %v627_v55 = vadd.f32 %v624_v51, %v597_v29  ;;  %v948_v29 = vld [vmem:[#allocation19 + $0x90] sm:$0xff] }
 0x3bf   :  { %v1717_v32 = vpack.c.bf16 %v948_v29, %v946_v28 }
 0x3c0   :  { %1474 = vmatmul.mubr.f32.vlgmr.msra.gmra.mrb[4].mxu1 %v625_v53  ;;  %628 = vst [vmem:[#allocation23] sm:$0xff] %v625_v53  ;;  %629 = vst [vmem:[#allocation23 + $0x8] sm:$0xff] %v626_v54 }
 0x3c1   :  { %630 = vst [vmem:[#allocation23 + $0x10] sm:$0xff] %v627_v55  ;;  %1476 = vmatprep.mubr.msk.f32.mxu1 %vm2156_vm0, %v2157_v1  ;;  %1702 = vmatpush1.bf16.msra.mxu1 %v1701_v6 }
 0x3c2   :  { %1704 = vmatprep.subr.bf16.mxu1 %v1703_v7 }
 0x3c4   :  { %1477 = vmatmul.mubr.f32.gmra.mrb[6].mxu1 %v626_v54 }
 0x3c5   :  { %1479 = vmatprep.mubr.msk.f32.mxu1 %vm2156_vm0, %v2157_v1  ;;  %1706 = vmatpush1.bf16.msra.mxu1 %v1705_v11 }
 0x3c6   :  { %1708 = vmatprep.subr.bf16.mxu1 %v1707_v12 }
 0x3c8   :  { %1480 = vmatmul.mubr.f32.gmra.mrb[8].mxu1 %v627_v55 }
 0x3c9   :  { %1038 = vmatprep.mubr.f32.mxu1 %v2157_v1  ;;  %1710 = vmatpush1.bf16.msra.mxu1 %v1709_v17 }
 0x3ca   :  { %1712 = vmatprep.subr.bf16.mxu1 %v1711_v18 }
 0x3cd   :  { %1714 = vmatpush1.bf16.msra.mxu1 %v1713_v26 }
 0x3ce   :  { %1716 = vmatprep.subr.bf16.mxu1 %v1715_v27 }
 0x3d1   :  { %1718 = vmatpush1.bf16.msra.mxu1 %v1717_v32 }
 0x3d2   :  { %1720 = vmatprep.subr.bf16.mxu1 %v1719_v33 }
 0x3d5   :  { %1722 = vmatpush1.bf16.msra.mxu1 %v1721_v38 }
 0x3d6   :  { %1724 = vmatprep.subr.bf16.mxu1 %v1723_v39 }
 0x3d9   :  { %1726 = vmatpush1.bf16.msra.mxu1 %v1725_v42 }
 0x3da   :  { %1728 = vmatprep.subr.bf16.mxu1 %v1727_v59 }
 0x3dd   :  { %1730 = vmatpush1.bf16.msra.mxu1 %v1729_v62 }
 0x493   :  { %v807_v45 = vpop.f32.mrb[4].mxu1 }
 0x494   :  { %v808_v46 = vadd.f32 %v807_v45, %v722_v44  ;;  %v1475_v0 = vpop.f32.mrb[5].mxu1 }
 0x496   :  { %v821_v47 = vmax.f32 %v808_v46, 0.0 }
 0x497   :  { %v812_v48 = vpop.f32.mrb[6].mxu1 }
 0x498   :  { %v813_v49 = vadd.f32 %v812_v48, %v722_v44  ;;  %v1478_v50 = vpop.f32.mrb[7].mxu1  ;;  %1515 = vmatmul.mubr.f32.vlgmr.msra.gmra.mrb[6].mxu0 %v821_v47 }
 0x499   :  { %1517 = vmatprep.mubr.msk.f32.mxu0 %vm2156_vm0, %v2157_v1 }
 0x49a   :  { %v822_v51 = vmax.f32 %v813_v49, 0.0 }
 0x49b   :  { %v817_v53 = vpop.f32.mrb[8].mxu1 }
 0x49c   :  { %v818_v54 = vadd.f32 %v817_v53, %v722_v44  ;;  %v1481_v55 = vpop.f32.mrb[9].mxu1  ;;  %1518 = vmatmul.mubr.f32.gmra.mrb[8].mxu0 %v822_v51 }
 0x49d   :  { %1520 = vmatprep.mubr.msk.f32.mxu0 %vm2156_vm0, %v2157_v1 }
 0x49e   :  { %v823_v56 = vmax.f32 %v818_v54, 0.0 }
 0x4a0   :  { %1521 = vmatmul.mubr.f32.gmra.mrb[10].mxu0 %v823_v56 }
 0x56b   :  { %v913_v2 = vpop.f32.mrb[6].mxu0 }
 0x56c   :  { %v914_v3 = vadd.f32 %v1194_v63, %v913_v2  ;;  %v1516_v4 = vpop.f32.mrb[7].mxu0 }
 0x56e   :  { %v927_v5 = vmax.f32 %v914_v3, 0.0 }
 0x56f   :  { %v918_v6 = vpop.f32.mrb[8].mxu0 }
 0x570   :  { %v919_v7 = vadd.f32 %v1194_v63, %v918_v6  ;;  %v1519_v8 = vpop.f32.mrb[9].mxu0  ;;  %1039 = vmatmul.mubr.f32.vlgmr.msra.gmra.mrb[10].mxu1 %v927_v5 }
 0x571   :  { %1044 = vmatprep.mubr.f32.mxu1 %v2157_v1 }
 0x572   :  { %v928_v9 = vmax.f32 %v919_v7, 0.0 }
 0x573   :  { %v923_v52 = vpop.f32.mrb[10].mxu0 }
 0x574   :  { %v924_v10 = vadd.f32 %v1194_v63, %v923_v52  ;;  %v1522_v11 = vpop.f32.mrb[11].mxu0  ;;  %1045 = vmatmul.mubr.f32.gmra.mrb[12].mxu1 %v928_v9 }
 0x575   :  { %1050 = vmatprep.mubr.f32.mxu1 %v2157_v1 }
 0x576   :  { %v929_v12 = vmax.f32 %v924_v10, 0.0 }
 0x578   :  { %1051 = vmatmul.mubr.f32.gmra.mrb[14].mxu1 %v929_v12 }
 0x579   :  { %2023 = shalt.err (!%p2020_p8)
}
 0x57a   :  { %s2024_s2 = scalar_lea.hbm %s2647_s18, 128 }
 0x57b   :  { %p2025_p9 = scmp.ne.s32.totalorder %s2647_s18, %s2024_s2  ;;  %p2028_p10 = scmp.lt.u32.totalorder %s2024_s2, %s2647_s18 }
 0x57d   :  { %p2030_p11 = pnand %p2028_p10, %p2025_p9 }
 0x57f   :  { %2033 = shalt.err (!%p2030_p11)
}
 0x580   :  { %1130 = dma.vmem_to_hbm [thread:$0]  %s1128_s21, 128, %s2647_s18, [#allocation22]  }
 0x581   :  { %s2159_s26 = smov [#allocation20]   ;;  %s2160_s0 = smov [#allocation23]  }
 0x582   :  { %s1117_s15 = sshll.u32 %s2159_s26, 4  ;;  %s1136_s23 = sshll.u32 %s2160_s0, 4  ;;  %s1118_s15 = int_to_ptr.vmem [resolvable:$true] %s1117_s15  ;;  %s2546_s23 = int_to_ptr.vmem [resolvable:$true] %s1136_s23 }
 0x583   :  { %s2034_s27 = scalar_lea.vmem %s1118_s15, 128  ;;  %p2039_p13 = scmp.lt.s32.totalorder %s1118_s15, %s1118_s15 }
 0x584   :  { %p2035_p12 = scmp.ne.s32.totalorder %s1118_s15, %s2034_s27  ;;  %p2040_p0 = scmp.lt.s32.totalorder %s2034_s27, %s2034_s27 }
 0x586   :  { %p2041_p1 = por %p2040_p0, %p2039_p13 }
 0x588   :  { %p2042_p2 = pnand %p2041_p1, %p2035_p12 }
 0x58a   :  { %2045 = shalt.err (!%p2042_p2)
}
 0x58b   :  { %s2046_s10 = scalar_lea.hbm %s2646_s17, 128 }
 0x58c   :  { %p2047_p3 = scmp.ne.s32.totalorder %s2646_s17, %s2046_s10  ;;  %p2050_p4 = scmp.lt.u32.totalorder %s2046_s10, %s2646_s17 }
 0x58e   :  { %p2052_p5 = pnand %p2050_p4, %p2047_p3 }
 0x590   :  { %2055 = shalt.err (!%p2052_p5)
}
 0x591   :  { %1120 = dma.vmem_to_hbm [thread:$0]  %s1118_s15, 128, %s2646_s17, [#allocation4]  }
 0x592   :  { %s2056_s21 = scalar_lea.vmem %s2546_s23, 384  ;;  %p2061_p7 = scmp.lt.s32.totalorder %s2546_s23, %s2546_s23 }
 0x593   :  { %p2057_p6 = scmp.ne.s32.totalorder %s2546_s23, %s2056_s21  ;;  %p2062_p8 = scmp.lt.s32.totalorder %s2056_s21, %s2056_s21 }
 0x595   :  { %p2063_p9 = por %p2062_p8, %p2061_p7 }
 0x597   :  { %p2064_p10 = pnand %p2063_p9, %p2057_p6 }
 0x599   :  { %2067 = shalt.err (!%p2064_p10)
}
 0x59a   :  { %s2068_s1 = scalar_lea.hbm %s2648_s19, 384 }
 0x59b   :  { %p2069_p11 = scmp.ne.s32.totalorder %s2648_s19, %s2068_s1  ;;  %p2072_p12 = scmp.lt.u32.totalorder %s2068_s1, %s2648_s19 }
 0x59d   :  { %p2074_p13 = pnand %p2072_p12, %p2069_p11 }
 0x59f   :  { %2077 = shalt.err (!%p2074_p13)
}
 0x5a0   :  { %1142 = dma.vmem_to_hbm [thread:$0]  %s2546_s23, 384, %s2648_s19, [#allocation22], %s2143_s3, %s2143_s3, %s2144_s22  }
 0x5a1   :  { %v962_v1 = vld [vmem:[%s2645_s16] sm:$0x3]  ;;  %s2161_s16 = smov [#allocation24]  }
 0x5a2   :  { %v967_v13 = vrot.slane %v962_v1, %v522_v20  ;;  %v971_v14 = vrot.slane %v962_v1, %v526_v22  ;;  %s1148_s19 = sshll.u32 %s2161_s16, 4  ;;  %s1149_s19 = int_to_ptr.vmem [resolvable:$true] %s1148_s19 }
 0x5a3   :  { %s2078_s26 = scalar_lea.vmem %s1149_s19, 384  ;;  %p2083_p1 = scmp.lt.s32.totalorder %s1149_s19, %s1149_s19 }
 0x5a4   :  { %p2079_p0 = scmp.ne.s32.totalorder %s1149_s19, %s2078_s26  ;;  %p2084_p2 = scmp.lt.s32.totalorder %s2078_s26, %s2078_s26 }
 0x5a6   :  { %p2085_p3 = por %p2084_p2, %p2083_p1 }
 0x5a8   :  { %p2086_p4 = pnand %p2085_p3, %p2079_p0 }
 0x643   :  { %v1040_v15 = vpop.f32.mrb[10].mxu1 }
 0x644   :  { %v1041_v16 = vadd.f32 %v1040_v15, %v967_v13  ;;  %v1042_v17 = vpop.f32.mrb[11].mxu1 }
 0x645   :  { %v2587_v18 = vadd.f32 %v1042_v17, %v971_v14 }
 0x646   :  { %1057 = vst [vmem:[#allocation24] sm:$0xff] %v1041_v16 }
 0x647   :  { %v1063_v21 = vand.u32 2147483647, %v2587_v18  ;;  %v1046_v23 = vpop.f32.mrb[12].mxu1 }
 0x648   :  { %v1047_v24 = vadd.f32 %v1046_v23, %v967_v13  ;;  %v1048_v25 = vpop.f32.mrb[13].mxu1 }
 0x649   :  { %v1066_v26 = vsub.f32 0.0, %v1063_v21  ;;  %v2590_v27 = vadd.f32 %v1048_v25, %v971_v14 }
 0x64a   :  { %1058 = vst [vmem:[#allocation24 + $0x8] sm:$0xff] %v1047_v24 }
 0x64b   :  { %v1069_v20 = vmul.f32 1.442695, %v1066_v26  ;;  %v1064_v19 = vand.u32 2147483647, %v2590_v27  ;;  %v1052_v22 = vpop.f32.mrb[14].mxu1 }
 0x64c   :  { %v1053_v28 = vadd.f32 %v1052_v22, %v967_v13  ;;  %v1054_v29 = vpop.f32.mrb[15].mxu1 }
 0x64d   :  { %1758 = vpow2.f32 %v1069_v20  ;;  %v1067_v30 = vsub.f32 0.0, %v1064_v19  ;;  %v2593_v31 = vadd.f32 %v1054_v29, %v971_v14 }
 0x64e   :  { %1059 = vst [vmem:[#allocation24 + $0x10] sm:$0xff] %v1053_v28 }
 0x64f   :  { %v1071_v32 = vmul.f32 1.442695, %v1067_v30  ;;  %v1065_v33 = vand.u32 2147483647, %v2593_v31 }
 0x650   :  { %2089 = shalt.err (!%p2086_p4)
}
 0x651   :  { %s2090_s23 = scalar_lea.hbm %s2649_s20, 384 }
 0x652   :  { %p2091_p5 = scmp.ne.s32.totalorder %s2649_s20, %s2090_s23  ;;  %p2094_p6 = scmp.lt.u32.totalorder %s2090_s23, %s2649_s20 }
 0x654   :  { %p2096_p7 = pnand %p2094_p6, %p2091_p5 }
 0x656   :  { %2099 = shalt.err (!%p2096_p7)
}
 0x657   :  { %1154 = dma.vmem_to_hbm [thread:$0]  %s1149_s19, 384, %s2649_s20, [#allocation25], %s2143_s3, %s2143_s3, %s2144_s22   ;;  %1760 = vpow2.f32 %v1071_v32  ;;  %v1068_v34 = vsub.f32 0.0, %v1065_v33  ;;  %v1759_v36 = vpop.eup %1758  ;;  %v1060_v50 = vmax.f32 %v2587_v18, 0.0  ;;  %v1061_v56 = vmax.f32 %v2590_v27, 0.0 }
 0x658   :  { %v1075_v37 = vadd.f32 1.0, %v1759_v36  ;;  %v1078_v40 = vmul.f32 -0.5, %v1759_v36  ;;  %v1081_v45 = vand.u32 2147483647, %v1759_v36  ;;  %v1062_v6 = vmax.f32 %v2593_v31, 0.0  ;;  %s2162_s20 = smov [#allocation26]  }
 0x659   :  { %v1073_v35 = vmul.f32 1.442695, %v1068_v34  ;;  %s1160_s6 = sshll.u32 %s2162_s20, 4  ;;  %s1161_s6 = int_to_ptr.vmem [resolvable:$true] %s1160_s6 }
 0x65a   :  { %v1079_v43 = vadd.f32 1.0, %v1078_v40  ;;  %vm1082_vm2 = vcmp.lt.f32.partialorder %v1081_v45, 0.0004427343  ;;  %s2100_s12 = scalar_lea.vmem %s1161_s6, 384  ;;  %p2105_p9 = scmp.lt.s32.totalorder %s1161_s6, %s1161_s6 }
 0x65b   :  { %1762 = vpow2.f32 %v1073_v35  ;;  %p2101_p8 = scmp.ne.s32.totalorder %s1161_s6, %s2100_s12  ;;  %p2106_p10 = scmp.lt.s32.totalorder %s2100_s12, %s2100_s12 }
 0x65c   :  { %1764 = vlog2.f32 %v1075_v37  ;;  %v1080_v47 = vmul.f32 %v1759_v36, %v1079_v43 }
 0x65d   :  { %p2107_p11 = por %p2106_p10, %p2105_p9 }
 0x65f   :  { %p2108_p12 = pnand %p2107_p11, %p2101_p8 }
 0x661   :  { %v1761_v38 = vpop.eup %1760 }
 0x662   :  { %v1084_v39 = vadd.f32 1.0, %v1761_v38  ;;  %v1087_v44 = vmul.f32 -0.5, %v1761_v38  ;;  %v1090_v51 = vand.u32 2147483647, %v1761_v38 }
 0x664   :  { %1766 = vlog2.f32 %v1084_v39  ;;  %v1088_v48 = vadd.f32 1.0, %v1087_v44  ;;  %vm1091_vm3 = vcmp.lt.f32.partialorder %v1090_v51, 0.0004427343 }
 0x665   :  { %v1763_v41 = vpop.eup %1762 }
 0x666   :  { %v1093_v42 = vadd.f32 1.0, %v1763_v41  ;;  %v1765_v46 = vpop.eup %1764  ;;  %v1096_v49 = vmul.f32 -0.5, %v1763_v41  ;;  %v1089_v58 = vmul.f32 %v1761_v38, %v1088_v48  ;;  %v1099_v61 = vand.u32 2147483647, %v1763_v41 }
 0x667   :  { %v1077_v0 = vmul.f32 0.6931472, %v1765_v46 }
 0x668   :  { %1768 = vlog2.f32 %v1093_v42  ;;  %v1097_v59 = vadd.f32 1.0, %v1096_v49  ;;  %vm1100_vm4 = vcmp.lt.f32.partialorder %v1099_v61, 0.0004427343 }
 0x669   :  { %v1083_v53 = vsel %vm1082_vm2, %v1080_v47, %v1077_v0 }
 0x66a   :  { %v1102_v55 = vadd.f32 %v1083_v53, %v1060_v50  ;;  %v1098_v4 = vmul.f32 %v1763_v41, %v1097_v59 }
 0x66c   :  { %v1105_v60 = vadd.f32 1e-06, %v1102_v55 }
 0x66e   :  { %v1767_v54 = vpop.eup %1766  ;;  %1108 = vst [vmem:[#allocation26] sm:$0xff] %v1105_v60 }
 0x66f   :  { %v1086_v57 = vmul.f32 0.6931472, %v1767_v54 }
 0x671   :  { %v1092_v62 = vsel %vm1091_vm3, %v1089_v58, %v1086_v57 }
 0x672   :  { %v1769_v63 = vpop.eup %1768  ;;  %v1103_v2 = vadd.f32 %v1092_v62, %v1061_v56 }
 0x673   :  { %v1095_v3 = vmul.f32 0.6931472, %v1769_v63 }
 0x674   :  { %v1106_v5 = vadd.f32 1e-06, %v1103_v2 }
 0x675   :  { %v1101_v7 = vsel %vm1100_vm4, %v1098_v4, %v1095_v3 }
 0x676   :  { %1109 = vst [vmem:[#allocation26 + $0x8] sm:$0xff] %v1106_v5  ;;  %v1104_v8 = vadd.f32 %v1101_v7, %v1062_v6 }
 0x678   :  { %v1107_v9 = vadd.f32 1e-06, %v1104_v8 }
 0x67a   :  { %1110 = vst [vmem:[#allocation26 + $0x10] sm:$0xff] %v1107_v9 }
 0x67b   :  { %2111 = shalt.err (!%p2108_p12)
}
 0x67c   :  { %s2670_s21 = sld [smem:[#allocation42_spill]] }
 0x682   :  { %s2112_s24 = scalar_lea.hbm %s2670_s21, 384 }
 0x683   :  { %p2113_p13 = scmp.ne.s32.totalorder %s2670_s21, %s2112_s24  ;;  %p2116_p0 = scmp.lt.u32.totalorder %s2112_s24, %s2670_s21 }
 0x685   :  { %p2118_p1 = pnand %p2116_p0, %p2113_p13 }
 0x687   :  { %2121 = shalt.err (!%p2118_p1)
}
 0x688   :  { %1166 = dma.vmem_to_hbm [thread:$0]  %s1161_s6, 384, %s2670_s21, [#allocation25], %s2143_s3, %s2143_s3, %s2144_s22  }
 0x689   :  { %2134 = dma.done.wait [#allocation4], 128  }
 0x68a   :  { %2135 = vsyncadd [#allocation4], 4294967168 }
 0x68b   :  { %2136 = dma.done.wait [#allocation22], 512  }
 0x68c   :  { %2137 = vsyncadd [#allocation22], 4294966784 }
 0x68d   :  { %2138 = dma.done.wait [#allocation25], 768  }
 0x68e   :  { %2139 = vsyncadd [#allocation25], 4294966528 }
 0x68f   :  { %1182 = vsyncpa [#allocation3], 1 }
 0x690   :  { %1183 = vsyncpa [#allocation6], 1 }
 0x691   :  { %1184 = vsyncpa [#allocation9], 1 }
 0x692   :  { %1185 = vsyncpa [#allocation12], 1 }
 0x693   :  { %1186 = vsyncpa [#allocation15], 1 }
 0x694   :  { %1187 = vsyncpa [#allocation18], 1 }
 0x695   :  { %1188 = vsyncpa [#allocation4], 1 }
 0x696   :  { %1189 = vsyncpa [#allocation22], 1 }
 0x697   :  { %1190 = vsyncpa [#allocation25], 1 }

</bundles_post_ra>
